<compile_context>
chip_gen: v7x
topology: tpu7x:2x2x1
jax: 0.10.0
libtpu: 0.0.40
codegen_flags: <defaults>
</compile_context>

<pallas_src>
import math

import numpy as np
import jax
import jax.numpy as jnp
from jax.experimental import pallas as pl
from jax.experimental.pallas import tpu as pltpu

# ----- scaled-down ViT-S config (same structure as vit_small_patch16_224) -----
B = 2                       # batch
C = 3                       # input channels
IMG = 32                    # image side (real: 224)
PATCH = 16                  # patch size (ViT-S/16)
GRID = IMG // PATCH
NP = GRID * GRID            # 4 patches
N_TOK = NP + 1              # + cls token = 5
N_PAD = 8                   # tokens per batch, padded to a sublane multiple
TOT = B * N_PAD             # 16 token rows processed as one flat slab
D = 128                     # embed dim (real ViT-S: 384)
HEADS = 4                   # real ViT-S: 6
HD = D // HEADS             # head dim = 32
MLP = 4 * D                 # mlp_ratio = 4 -> 512
NUM_CLASSES = 10
LANES = 128                 # lane-dense classifier output width
DEPTH = 2                   # real ViT-S: 12
EPS = 1e-6                  # timm ViT LayerNorm eps
K_PATCH = C * PATCH * PATCH # 768
WBIG = 3 * D + D + MLP      # qkv | proj | fc1 lane-concat width = 1024

# Trace-time constant block-diagonal attention mask over the padded [B, N_PAD]
# token layout: attend only within the same batch element, only to valid keys.
_rows = np.arange(TOT)[:, None]
_cols = np.arange(TOT)[None, :]
_mask = (_rows // N_PAD == _cols // N_PAD) & (_cols % N_PAD < N_TOK)
NEG_NP = np.where(_mask, 0.0, -1e30).astype(np.float32)        # (TOT, TOT)


# ----------------------------- shared math helpers ----------------------------
def _layernorm(x, w, b):
    mu = jnp.mean(x, axis=-1, keepdims=True)
    var = jnp.mean((x - mu) ** 2, axis=-1, keepdims=True)
    return (x - mu) * jax.lax.rsqrt(var + EPS) * w + b


def _erf_approx(x):
    # Abramowitz & Stegun 7.1.26, |err| < 1.5e-7 — reproduces exact-erf GELU
    # (PyTorch nn.GELU default).  Kernel-only (uses pl.reciprocal on EUP).
    a1, a2, a3, a4, a5 = 0.254829592, -0.284496736, 1.421413741, -1.453152027, 1.061405429
    p = 0.3275911
    ax = jnp.abs(x)
    t = pl.reciprocal(1.0 + p * ax, approx=True)
    poly = ((((a5 * t + a4) * t + a3) * t + a2) * t + a1) * t
    y = 1.0 - poly * jnp.exp(-ax * ax)
    return jnp.where(x >= 0.0, y, -y)


def _gelu_exact(x):
    return 0.5 * x * (1.0 + _erf_approx(x * 0.7071067811865476))


# ------------------------- the depth-pipelined kernel --------------------------
def vit_kernel(pp_ref, pw_ref, tbneg_ref, wbig_ref, wfc2_ref, small_ref,
               hw_ref, fsm_ref, o_ref, x_ref):
    l = pl.program_id(0)
    last = pl.num_programs(0) - 1

    # --- layer 0 only: patch embed (bf16 MXU, f32 acc) + folded cls/pos/patch_b
    @pl.when(l == 0)
    def _():
        x_ref[...] = (
            jnp.dot(pp_ref[...], pw_ref[...], preferred_element_type=jnp.float32)
            + tbneg_ref[:, :D])

    neg = tbneg_ref[:, D:D + TOT]               # (TOT, TOT) additive mask bias
    x = x_ref[...]                              # activation carry (f32)

    # --- unpack this layer's packed parameters (single slabs, lane slices) ---
    sm = small_ref[0]                           # (8, MLP) f32
    ln1w, ln1b = sm[0:1, 0:D], sm[0:1, D:2 * D]
    ln2w, ln2b = sm[0:1, 2 * D:3 * D], sm[0:1, 3 * D:4 * D]
    qkvb = sm[1:2, 0:3 * D]
    projb = sm[1:2, 3 * D:4 * D]
    fc1b = sm[2:3, 0:MLP]
    fc2b = sm[3:4, 0:D]

    wb = wbig_ref[0]                            # (D, 1024) bf16: qkv | proj | fc1
    qkvw = wb[:, 0:3 * D]
    projw = wb[:, 3 * D:4 * D]
    fc1w = wb[:, 4 * D:4 * D + MLP]
    fc2w = wfc2_ref[0]                          # (MLP, D) bf16

    scale = 1.0 / math.sqrt(HD)

    # ---- multi-head self attention (pre-norm) ----
    xn = _layernorm(x, ln1w, ln1b)
    qkv = jnp.dot(xn.astype(jnp.bfloat16), qkvw,
                  preferred_element_type=jnp.float32) + qkvb
    q = qkv[:, :D].astype(jnp.bfloat16)
    k = qkv[:, D:2 * D].astype(jnp.bfloat16)
    v = qkv[:, 2 * D:].astype(jnp.bfloat16)

    heads = []
    for h in range(HEADS):                      # 4 score + 4 AV small matmuls
        qh = q[:, h * HD:(h + 1) * HD]
        kh = k[:, h * HD:(h + 1) * HD]
        vh = v[:, h * HD:(h + 1) * HD]
        s = jax.lax.dot_general(
            qh, kh, (((1,), (1,)), ((), ())),
            preferred_element_type=jnp.float32) * scale + neg          # (TOT, TOT)
        s = s - jnp.max(s, axis=-1, keepdims=True)
        p = jnp.exp(s)
        p = p * pl.reciprocal(jnp.sum(p, axis=-1, keepdims=True), approx=True)
        heads.append(jnp.dot(p.astype(jnp.bfloat16), vh,
                             preferred_element_type=jnp.float32))
    o = jnp.concatenate(heads, axis=-1)         # (TOT, D)
    x = x + jnp.dot(o.astype(jnp.bfloat16), projw,
                    preferred_element_type=jnp.float32) + projb

    # ---- MLP (pre-norm) ----
    xn = _layernorm(x, ln2w, ln2b)
    h1 = _gelu_exact(jnp.dot(xn.astype(jnp.bfloat16), fc1w,
                             preferred_element_type=jnp.float32) + fc1b)
    x = x + jnp.dot(h1.astype(jnp.bfloat16), fc2w,
                    preferred_element_type=jnp.float32) + fc2b

    x_ref[...] = x                              # carry to next grid step

    # ---- last layer only: final LN + lane-dense classifier ----
    @pl.when(l == last)
    def _():
        xn_f = _layernorm(x, fsm_ref[0:1, :], fsm_ref[1:2, :])
        o_ref[...] = (jnp.dot(xn_f.astype(jnp.bfloat16), hw_ref[...],
                              preferred_element_type=jnp.float32)
                      + fsm_ref[2:3, :])


# --------------------------------- host glue ------------------------------------
def patchify(x):
    # NCHW -> (B*NP, C*P*P); identical flattening order to Conv2d(weight.view(D,-1))
    b, c, h, w = x.shape
    x = x.reshape(b, c, GRID, PATCH, GRID, PATCH)
    x = x.transpose(0, 2, 4, 1, 3, 5)
    return x.reshape(b * NP, K_PATCH)


def pack_params(params):
    """One-time host packing: bf16 weight slabs + lane-concatenated small params."""
    blk = params["blocks"]

    wbig = jnp.concatenate(
        [blk["qkv_w"], blk["proj_w"], blk["fc1_w"]], axis=-1
    ).astype(jnp.bfloat16)                                     # (DEPTH, D, 1024)
    wfc2 = blk["fc2_w"].astype(jnp.bfloat16)                    # (DEPTH, MLP, D)

    small = jnp.zeros((DEPTH, 8, MLP), jnp.float32)
    small = small.at[:, 0, 0:D].set(blk["ln1_w"][:, 0])
    small = small.at[:, 0, D:2 * D].set(blk["ln1_b"][:, 0])
    small = small.at[:, 0, 2 * D:3 * D].set(blk["ln2_w"][:, 0])
    small = small.at[:, 0, 3 * D:4 * D].set(blk["ln2_b"][:, 0])
    small = small.at[:, 1, 0:3 * D].set(blk["qkv_b"][:, 0])
    small = small.at[:, 1, 3 * D:4 * D].set(blk["proj_b"][:, 0])
    small = small.at[:, 2, 0:MLP].set(blk["fc1_b"][:, 0])
    small = small.at[:, 3, 0:D].set(blk["fc2_b"][:, 0])

    # token bias (cls+pos / pos+patch_b, zeros for pad rows) | attention mask bias
    tb = jnp.zeros((B, N_PAD, D), jnp.float32)
    tb = tb.at[:, 0, :].set(params["cls"][0, 0] + params["pos"][0, 0])
    tb = tb.at[:, 1:1 + NP, :].set(params["pos"][0, 1:] + params["patch_b"])
    tb = tb.reshape(TOT, D)
    negpad = jnp.zeros((TOT, D), jnp.float32).at[:, :TOT].set(jnp.asarray(NEG_NP))
    tbneg = jnp.concatenate([tb, negpad], axis=-1)              # (TOT, 2*D)

    hw = (jnp.zeros((D, LANES), jnp.float32)
          .at[:, :NUM_CLASSES].set(params["head_w"])).astype(jnp.bfloat16)
    fsm = jnp.zeros((8, LANES), jnp.float32)
    fsm = fsm.at[0, :D].set(params["norm_w"][0])
    fsm = fsm.at[1, :D].set(params["norm_b"][0])
    fsm = fsm.at[2, :NUM_CLASSES].set(params["head_b"][0])

    return dict(pw=params["patch_w"].astype(jnp.bfloat16), tbneg=tbneg,
                wbig=wbig, wfc2=wfc2, small=small, hw=hw, fsm=fsm)


@jax.jit
def vit_forward(x, packed):
    # Input-side layout glue only: im2col patchify -> padded bf16 token slab.
    patches = patchify(x)                                       # (B*NP, K)
    pp = jnp.zeros((B, N_PAD, K_PATCH), jnp.float32)
    pp = pp.at[:, 1:1 + NP, :].set(patches.reshape(B, NP, K_PATCH))
    pp = pp.reshape(TOT, K_PATCH).astype(jnp.bfloat16)

    out = pl.pallas_call(
        vit_kernel,
        out_shape=jax.ShapeDtypeStruct((TOT, LANES), jnp.float32),
        grid_spec=pltpu.PrefetchScalarGridSpec(
            num_scalar_prefetch=0,
            grid=(DEPTH,),
            in_specs=[
                pl.BlockSpec((TOT, K_PATCH), lambda l: (0, 0)),      # pp
                pl.BlockSpec((K_PATCH, D), lambda l: (0, 0)),        # patch_w
                pl.BlockSpec((TOT, 2 * D), lambda l: (0, 0)),        # tb | neg
                pl.BlockSpec((1, D, WBIG), lambda l: (l, 0, 0)),     # qkv|proj|fc1
                pl.BlockSpec((1, MLP, D), lambda l: (l, 0, 0)),      # fc2
                pl.BlockSpec((1, 8, MLP), lambda l: (l, 0, 0)),      # small params
                pl.BlockSpec((D, LANES), lambda l: (0, 0)),          # head_w (padded)
                pl.BlockSpec((8, LANES), lambda l: (0, 0)),          # norm_w/b, head_b
            ],
            out_specs=pl.BlockSpec((TOT, LANES), lambda l: (0, 0)),
            scratch_shapes=[pltpu.VMEM((TOT, D), jnp.float32)],      # activation carry
        ),
        compiler_params=pltpu.CompilerParams(
            dimension_semantics=("arbitrary",)),
    )(pp, packed["pw"], packed["tbneg"], packed["wbig"], packed["wfc2"],
      packed["small"], packed["hw"], packed["fsm"])

    return out.reshape(B, N_PAD, LANES)[:, 0, :NUM_CLASSES]           # (B, 10)


# ------------------------------ reference (pure JAX, f32) ------------------------
def _layernorm_ref(x, w, b):
    mu = jnp.mean(x, axis=-1, keepdims=True)
    var = jnp.mean((x - mu) ** 2, axis=-1, keepdims=True)
    return (x - mu) * jax.lax.rsqrt(var + EPS) * w + b


def vit_reference(x, params):
    patches = patchify(x)
    emb = (patches @ params["patch_w"] + params["patch_b"]).reshape(B, NP, D)
    cls = jnp.broadcast_to(params["cls"], (B, 1, D))
    tok = jnp.concatenate([cls, emb], axis=1) + params["pos"]
    blk = params["blocks"]
    for l in range(DEPTH):
        xn = _layernorm_ref(tok, blk["ln1_w"][l], blk["ln1_b"][l])
        qkv = xn @ blk["qkv_w"][l] + blk["qkv_b"][l]
        q, k, v = jnp.split(qkv, 3, axis=-1)
        q = q.reshape(B, N_TOK, HEADS, HD).transpose(0, 2, 1, 3)
        k = k.reshape(B, N_TOK, HEADS, HD).transpose(0, 2, 1, 3)
        v = v.reshape(B, N_TOK, HEADS, HD).transpose(0, 2, 1, 3)
        s = (q @ k.transpose(0, 1, 3, 2)) / math.sqrt(HD)
        p = jax.nn.softmax(s, axis=-1)
        o = (p @ v).transpose(0, 2, 1, 3).reshape(B, N_TOK, D)
        tok = tok + o @ blk["proj_w"][l] + blk["proj_b"][l]
        xn = _layernorm_ref(tok, blk["ln2_w"][l], blk["ln2_b"][l])
        h1 = jax.nn.gelu(xn @ blk["fc1_w"][l] + blk["fc1_b"][l], approximate=False)
        tok = tok + h1 @ blk["fc2_w"][l] + blk["fc2_b"][l]
    xn = _layernorm_ref(tok[:, 0, :], params["norm_w"], params["norm_b"])
    return xn @ params["head_w"] + params["head_b"]


# ------------------------------ parameter init ----------------------------------
def init_params(key):
    ks = jax.random.split(key, 6)

    def nrm(k, shape, scale=0.02):
        return scale * jax.random.normal(k, shape, jnp.float32)

    p = {
        "patch_w": nrm(ks[0], (K_PATCH, D)),
        "patch_b": nrm(ks[1], (1, D)),
        "cls": nrm(ks[2], (1, 1, D)),
        "pos": nrm(ks[3], (1, N_TOK, D)),
    }
    bk = jax.random.split(ks[4], 8)
    p["blocks"] = dict(
        ln1_w=jnp.ones((DEPTH, 1, D), jnp.float32),
        ln1_b=jnp.zeros((DEPTH, 1, D), jnp.float32),
        qkv_w=nrm(bk[0], (DEPTH, D, 3 * D)), qkv_b=nrm(bk[1], (DEPTH, 1, 3 * D)),
        proj_w=nrm(bk[2], (DEPTH, D, D)), proj_b=nrm(bk[3], (DEPTH, 1, D)),
        ln2_w=jnp.ones((DEPTH, 1, D), jnp.float32),
        ln2_b=jnp.zeros((DEPTH, 1, D), jnp.float32),
        fc1_w=nrm(bk[4], (DEPTH, D, MLP)), fc1_b=nrm(bk[5], (DEPTH, 1, MLP)),
        fc2_w=nrm(bk[6], (DEPTH, MLP, D)), fc2_b=nrm(bk[7], (DEPTH, 1, D)),
    )
    hk = jax.random.split(ks[5], 2)
    p["norm_w"] = jnp.ones((1, D), jnp.float32)
    p["norm_b"] = jnp.zeros((1, D), jnp.float32)
    p["head_w"] = nrm(hk[0], (D, NUM_CLASSES))
    p["head_b"] = nrm(hk[1], (1, NUM_CLASSES))
    return p


# ----------------------------------- main ---------------------------------------
if __name__ == "__main__":
    key = jax.random.PRNGKey(0)
    pkey, xkey = jax.random.split(key)
    params = init_params(pkey)
    packed = pack_params(params)
    x = jax.random.normal(xkey, (B, C, IMG, IMG), jnp.float32)

    logits = jax.block_until_ready(vit_forward(x, packed))
    assert logits.shape == (B, NUM_CLASSES)

    ref = vit_reference(x, params)
    err = jnp.max(jnp.abs(logits - ref))
    # bf16 matmul operands (f32 accumulate / LN / softmax / GELU) vs f32 reference.
    assert jnp.allclose(logits, ref, atol=2e-2, rtol=2e-2), (
        f"mismatch: max abs err = {err}")

    print("KERNEL_OK")
</pallas_src>

<mosaic_0001>
module attributes {stable_mosaic.version = 11 : i64} {
  func.func @vit_kernel(%arg0: i32, %arg1: memref<16x768xbf16, #tpu.memory_space<vmem>>, %arg2: memref<768x128xbf16, #tpu.memory_space<vmem>>, %arg3: memref<16x256xf32, #tpu.memory_space<vmem>>, %arg4: memref<1x128x1024xbf16, #tpu.memory_space<vmem>>, %arg5: memref<1x512x128xbf16, #tpu.memory_space<vmem>>, %arg6: memref<1x8x512xf32, #tpu.memory_space<vmem>>, %arg7: memref<128x128xbf16, #tpu.memory_space<vmem>>, %arg8: memref<8x128xf32, #tpu.memory_space<vmem>>, %arg9: memref<16x128xf32, #tpu.memory_space<vmem>>, %arg10: memref<16x128xf32, #tpu.memory_space<vmem>>) attributes {dimension_semantics = [#tpu.dimension_semantics<arbitrary>], iteration_bounds = array<i64: 2>, scalar_prefetch = 0 : i64, scratch_operands = 1 : i64, tpu.core_type = #tpu.core_type<tc>, window_params = [{pipeline_mode = #tpu.pipeline_mode<synchronous>, transform_indices = @transform_0, window_bounds = array<i64: 16, 768>}, {pipeline_mode = #tpu.pipeline_mode<synchronous>, transform_indices = @transform_1, window_bounds = array<i64: 768, 128>}, {pipeline_mode = #tpu.pipeline_mode<synchronous>, transform_indices = @transform_2, window_bounds = array<i64: 16, 256>}, {transform_indices = @transform_3, window_bounds = array<i64: 1, 128, 1024>}, {transform_indices = @transform_4, window_bounds = array<i64: 1, 512, 128>}, {transform_indices = @transform_5, window_bounds = array<i64: 1, 8, 512>}, {pipeline_mode = #tpu.pipeline_mode<synchronous>, transform_indices = @transform_6, window_bounds = array<i64: 128, 128>}, {pipeline_mode = #tpu.pipeline_mode<synchronous>, transform_indices = @transform_7, window_bounds = array<i64: 8, 128>}, {pipeline_mode = #tpu.pipeline_mode<synchronous>, transform_indices = @transform_8, window_bounds = array<i64: 16, 128>}]} {
    %c0_i32 = arith.constant 0 : i32
    %0 = arith.cmpi eq, %arg0, %c0_i32 : i32
    %1 = arith.extui %0 : i1 to i32
    %c0_i32_0 = arith.constant 0 : i32
    %2 = arith.cmpi ne, %1, %c0_i32_0 : i32
    scf.if %2 {
      %c0_62 = arith.constant 0 : index
      %c0_63 = arith.constant 0 : index
      %210 = vector.load %arg1[%c0_62, %c0_63] : memref<16x768xbf16, #tpu.memory_space<vmem>>, vector<16x768xbf16>
      %c0_64 = arith.constant 0 : index
      %c0_65 = arith.constant 0 : index
      %211 = vector.load %arg2[%c0_64, %c0_65] : memref<768x128xbf16, #tpu.memory_space<vmem>>, vector<768x128xbf16>
      %cst_66 = arith.constant dense<0.000000e+00> : vector<16x128xf32>
      %212 = tpu.matmul %210, %211, %cst_66 {dimension_numbers = #tpu.dot_dimension_numbers<[1], [0], [0], [1], [0, 0, 1, 1], [], []>} : vector<16x768xbf16>, vector<768x128xbf16>, vector<16x128xf32> -> vector<16x128xf32>
      %c0_67 = arith.constant 0 : index
      %c0_68 = arith.constant 0 : index
      %213 = vector.load %arg3[%c0_67, %c0_68] : memref<16x256xf32, #tpu.memory_space<vmem>>, vector<16x128xf32>
      %214 = arith.addf %212, %213 : vector<16x128xf32>
      %c0_69 = arith.constant 0 : index
      %c0_70 = arith.constant 0 : index
      %215 = vector.load %arg10[%c0_69, %c0_70] : memref<16x128xf32, #tpu.memory_space<vmem>>, vector<16x128xf32>
      tpu.vector_store %arg10[%c0_69, %c0_70], %214 {strides = array<i32>} : memref<16x128xf32, #tpu.memory_space<vmem>>, vector<16x128xf32>,
    } else {
    }
    %c0 = arith.constant 0 : index
    %c128 = arith.constant 128 : index
    %3 = vector.load %arg3[%c0, %c128] : memref<16x256xf32, #tpu.memory_space<vmem>>, vector<16x16xf32>
    %c0_1 = arith.constant 0 : index
    %c0_2 = arith.constant 0 : index
    %4 = vector.load %arg10[%c0_1, %c0_2] : memref<16x128xf32, #tpu.memory_space<vmem>>, vector<16x128xf32>
    %c0_3 = arith.constant 0 : index
    %c0_4 = arith.constant 0 : index
    %c0_5 = arith.constant 0 : index
    %5 = vector.load %arg6[%c0_3, %c0_4, %c0_5] : memref<1x8x512xf32, #tpu.memory_space<vmem>>, vector<1x8x512xf32>
    %6 = vector.shape_cast %5 : vector<1x8x512xf32> to vector<8x512xf32>
    %7 = vector.extract_strided_slice %6 {offsets = [0, 0], sizes = [1, 128], strides = [1, 1]} : vector<8x512xf32> to vector<1x128xf32>
    %8 = vector.extract_strided_slice %6 {offsets = [0, 128], sizes = [1, 128], strides = [1, 1]} : vector<8x512xf32> to vector<1x128xf32>
    %9 = vector.extract_strided_slice %6 {offsets = [0, 256], sizes = [1, 128], strides = [1, 1]} : vector<8x512xf32> to vector<1x128xf32>
    %10 = vector.extract_strided_slice %6 {offsets = [0, 384], sizes = [1, 128], strides = [1, 1]} : vector<8x512xf32> to vector<1x128xf32>
    %11 = vector.extract_strided_slice %6 {offsets = [1, 0], sizes = [1, 384], strides = [1, 1]} : vector<8x512xf32> to vector<1x384xf32>
    %12 = vector.extract_strided_slice %6 {offsets = [1, 384], sizes = [1, 128], strides = [1, 1]} : vector<8x512xf32> to vector<1x128xf32>
    %13 = vector.extract_strided_slice %6 {offsets = [2, 0], sizes = [1, 512], strides = [1, 1]} : vector<8x512xf32> to vector<1x512xf32>
    %14 = vector.extract_strided_slice %6 {offsets = [3, 0], sizes = [1, 128], strides = [1, 1]} : vector<8x512xf32> to vector<1x128xf32>
    %c0_6 = arith.constant 0 : index
    %c0_7 = arith.constant 0 : index
    %c0_8 = arith.constant 0 : index
    %15 = vector.load %arg4[%c0_6, %c0_7, %c0_8] : memref<1x128x1024xbf16, #tpu.memory_space<vmem>>, vector<1x128x1024xbf16>
    %16 = vector.shape_cast %15 : vector<1x128x1024xbf16> to vector<128x1024xbf16>
    %17 = vector.extract_strided_slice %16 {offsets = [0, 0], sizes = [128, 384], strides = [1, 1]} : vector<128x1024xbf16> to vector<128x384xbf16>
    %18 = vector.extract_strided_slice %16 {offsets = [0, 384], sizes = [128, 128], strides = [1, 1]} : vector<128x1024xbf16> to vector<128x128xbf16>
    %19 = vector.extract_strided_slice %16 {offsets = [0, 512], sizes = [128, 512], strides = [1, 1]} : vector<128x1024xbf16> to vector<128x512xbf16>
    %c0_9 = arith.constant 0 : index
    %c0_10 = arith.constant 0 : index
    %c0_11 = arith.constant 0 : index
    %20 = vector.load %arg5[%c0_9, %c0_10, %c0_11] : memref<1x512x128xbf16, #tpu.memory_space<vmem>>, vector<1x512x128xbf16>
    %21 = vector.shape_cast %20 : vector<1x512x128xbf16> to vector<512x128xbf16>
    %cst = arith.constant dense<0.000000e+00> : vector<16xf32>
    %22 = vector.multi_reduction <add>, %4, %cst [1] : vector<16x128xf32> to vector<16xf32>
    %23 = vector.shape_cast %22 : vector<16xf32> to vector<16x1xf32>
    %cst_12 = arith.constant 1.280000e+02 : f32
    %24 = vector.broadcast %cst_12 : f32 to vector<16x1xf32>
    %25 = arith.divf %23, %24 : vector<16x1xf32>
    %26 = vector.broadcast %25 : vector<16x1xf32> to vector<16x128xf32>
    %27 = arith.subf %4, %26 : vector<16x128xf32>
    %28 = arith.mulf %27, %27 : vector<16x128xf32>
    %cst_13 = arith.constant dense<0.000000e+00> : vector<16xf32>
    %29 = vector.multi_reduction <add>, %28, %cst_13 [1] : vector<16x128xf32> to vector<16xf32>
    %30 = vector.shape_cast %29 : vector<16xf32> to vector<16x1xf32>
    %cst_14 = arith.constant 1.280000e+02 : f32
    %31 = vector.broadcast %cst_14 : f32 to vector<16x1xf32>
    %32 = arith.divf %30, %31 : vector<16x1xf32>
    %33 = vector.broadcast %25 : vector<16x1xf32> to vector<16x128xf32>
    %34 = arith.subf %4, %33 : vector<16x128xf32>
    %cst_15 = arith.constant 9.99999997E-7 : f32
    %35 = vector.broadcast %cst_15 : f32 to vector<16x1xf32>
    %36 = arith.addf %32, %35 : vector<16x1xf32>
    %37 = math.rsqrt %36 : vector<16x1xf32>
    %38 = vector.broadcast %37 : vector<16x1xf32> to vector<16x128xf32>
    %39 = arith.mulf %34, %38 : vector<16x128xf32>
    %40 = vector.broadcast %7 : vector<1x128xf32> to vector<16x128xf32>
    %41 = arith.mulf %39, %40 : vector<16x128xf32>
    %42 = vector.broadcast %8 : vector<1x128xf32> to vector<16x128xf32>
    %43 = arith.addf %41, %42 : vector<16x128xf32>
    %44 = arith.truncf %43 : vector<16x128xf32> to vector<16x128xbf16>
    %cst_16 = arith.constant dense<0.000000e+00> : vector<16x384xf32>
    %45 = tpu.matmul %44, %17, %cst_16 {dimension_numbers = #tpu.dot_dimension_numbers<[1], [0], [0], [1], [0, 0, 1, 1], [], []>} : vector<16x128xbf16>, vector<128x384xbf16>, vector<16x384xf32> -> vector<16x384xf32>
    %46 = vector.broadcast %11 : vector<1x384xf32> to vector<16x384xf32>
    %47 = arith.addf %45, %46 : vector<16x384xf32>
    %48 = vector.extract_strided_slice %47 {offsets = [0, 0], sizes = [16, 128], strides = [1, 1]} : vector<16x384xf32> to vector<16x128xf32>
    %49 = arith.truncf %48 : vector<16x128xf32> to vector<16x128xbf16>
    %50 = vector.extract_strided_slice %47 {offsets = [0, 128], sizes = [16, 128], strides = [1, 1]} : vector<16x384xf32> to vector<16x128xf32>
    %51 = arith.truncf %50 : vector<16x128xf32> to vector<16x128xbf16>
    %52 = vector.extract_strided_slice %47 {offsets = [0, 256], sizes = [16, 128], strides = [1, 1]} : vector<16x384xf32> to vector<16x128xf32>
    %53 = arith.truncf %52 : vector<16x128xf32> to vector<16x128xbf16>
    %54 = vector.extract_strided_slice %49 {offsets = [0, 0], sizes = [16, 32], strides = [1, 1]} : vector<16x128xbf16> to vector<16x32xbf16>
    %55 = vector.extract_strided_slice %51 {offsets = [0, 0], sizes = [16, 32], strides = [1, 1]} : vector<16x128xbf16> to vector<16x32xbf16>
    %56 = vector.extract_strided_slice %53 {offsets = [0, 0], sizes = [16, 32], strides = [1, 1]} : vector<16x128xbf16> to vector<16x32xbf16>
    %cst_17 = arith.constant dense<0.000000e+00> : vector<16x16xf32>
    %57 = tpu.matmul %54, %55, %cst_17 {dimension_numbers = #tpu.dot_dimension_numbers<[1], [1], [0], [0], [0, 0, 1, 0], [], []>} : vector<16x32xbf16>, vector<16x32xbf16>, vector<16x16xf32> -> vector<16x16xf32>
    %cst_18 = arith.constant 0.176776692 : f32
    %58 = vector.broadcast %cst_18 : f32 to vector<16x16xf32>
    %59 = arith.mulf %57, %58 : vector<16x16xf32>
    %60 = arith.addf %59, %3 : vector<16x16xf32>
    %cst_19 = arith.constant dense<0xFF800000> : vector<16xf32>
    %61 = vector.multi_reduction <maximumf>, %60, %cst_19 [1] : vector<16x16xf32> to vector<16xf32>
    %62 = vector.shape_cast %61 : vector<16xf32> to vector<16x1xf32>
    %63 = vector.broadcast %62 : vector<16x1xf32> to vector<16x16xf32>
    %64 = arith.subf %60, %63 : vector<16x16xf32>
    %65 = math.exp %64 : vector<16x16xf32>
    %cst_20 = arith.constant dense<0.000000e+00> : vector<16xf32>
    %66 = vector.multi_reduction <add>, %65, %cst_20 [1] : vector<16x16xf32> to vector<16xf32>
    %67 = vector.shape_cast %66 : vector<16xf32> to vector<16x1xf32>
    %68 = tpu.reciprocal %67 {approx = true} : vector<16x1xf32> -> vector<16x1xf32>
    %69 = vector.broadcast %68 : vector<16x1xf32> to vector<16x16xf32>
    %70 = arith.mulf %65, %69 : vector<16x16xf32>
    %71 = arith.truncf %70 : vector<16x16xf32> to vector<16x16xbf16>
    %cst_21 = arith.constant dense<0.000000e+00> : vector<16x32xf32>
    %72 = tpu.matmul %71, %56, %cst_21 {dimension_numbers = #tpu.dot_dimension_numbers<[1], [0], [0], [1], [0, 0, 1, 1], [], []>} : vector<16x16xbf16>, vector<16x32xbf16>, vector<16x32xf32> -> vector<16x32xf32>
    %73 = vector.extract_strided_slice %49 {offsets = [0, 32], sizes = [16, 32], strides = [1, 1]} : vector<16x128xbf16> to vector<16x32xbf16>
    %74 = vector.extract_strided_slice %51 {offsets = [0, 32], sizes = [16, 32], strides = [1, 1]} : vector<16x128xbf16> to vector<16x32xbf16>
    %75 = vector.extract_strided_slice %53 {offsets = [0, 32], sizes = [16, 32], strides = [1, 1]} : vector<16x128xbf16> to vector<16x32xbf16>
    %cst_22 = arith.constant dense<0.000000e+00> : vector<16x16xf32>
    %76 = tpu.matmul %73, %74, %cst_22 {dimension_numbers = #tpu.dot_dimension_numbers<[1], [1], [0], [0], [0, 0, 1, 0], [], []>} : vector<16x32xbf16>, vector<16x32xbf16>, vector<16x16xf32> -> vector<16x16xf32>
    %cst_23 = arith.constant 0.176776692 : f32
    %77 = vector.broadcast %cst_23 : f32 to vector<16x16xf32>
    %78 = arith.mulf %76, %77 : vector<16x16xf32>
    %79 = arith.addf %78, %3 : vector<16x16xf32>
    %cst_24 = arith.constant dense<0xFF800000> : vector<16xf32>
    %80 = vector.multi_reduction <maximumf>, %79, %cst_24 [1] : vector<16x16xf32> to vector<16xf32>
    %81 = vector.shape_cast %80 : vector<16xf32> to vector<16x1xf32>
    %82 = vector.broadcast %81 : vector<16x1xf32> to vector<16x16xf32>
    %83 = arith.subf %79, %82 : vector<16x16xf32>
    %84 = math.exp %83 : vector<16x16xf32>
    %cst_25 = arith.constant dense<0.000000e+00> : vector<16xf32>
    %85 = vector.multi_reduction <add>, %84, %cst_25 [1] : vector<16x16xf32> to vector<16xf32>
    %86 = vector.shape_cast %85 : vector<16xf32> to vector<16x1xf32>
    %87 = tpu.reciprocal %86 {approx = true} : vector<16x1xf32> -> vector<16x1xf32>
    %88 = vector.broadcast %87 : vector<16x1xf32> to vector<16x16xf32>
    %89 = arith.mulf %84, %88 : vector<16x16xf32>
    %90 = arith.truncf %89 : vector<16x16xf32> to vector<16x16xbf16>
    %cst_26 = arith.constant dense<0.000000e+00> : vector<16x32xf32>
    %91 = tpu.matmul %90, %75, %cst_26 {dimension_numbers = #tpu.dot_dimension_numbers<[1], [0], [0], [1], [0, 0, 1, 1], [], []>} : vector<16x16xbf16>, vector<16x32xbf16>, vector<16x32xf32> -> vector<16x32xf32>
    %92 = vector.extract_strided_slice %49 {offsets = [0, 64], sizes = [16, 32], strides = [1, 1]} : vector<16x128xbf16> to vector<16x32xbf16>
    %93 = vector.extract_strided_slice %51 {offsets = [0, 64], sizes = [16, 32], strides = [1, 1]} : vector<16x128xbf16> to vector<16x32xbf16>
    %94 = vector.extract_strided_slice %53 {offsets = [0, 64], sizes = [16, 32], strides = [1, 1]} : vector<16x128xbf16> to vector<16x32xbf16>
    %cst_27 = arith.constant dense<0.000000e+00> : vector<16x16xf32>
    %95 = tpu.matmul %92, %93, %cst_27 {dimension_numbers = #tpu.dot_dimension_numbers<[1], [1], [0], [0], [0, 0, 1, 0], [], []>} : vector<16x32xbf16>, vector<16x32xbf16>, vector<16x16xf32> -> vector<16x16xf32>
    %cst_28 = arith.constant 0.176776692 : f32
    %96 = vector.broadcast %cst_28 : f32 to vector<16x16xf32>
    %97 = arith.mulf %95, %96 : vector<16x16xf32>
    %98 = arith.addf %97, %3 : vector<16x16xf32>
    %cst_29 = arith.constant dense<0xFF800000> : vector<16xf32>
    %99 = vector.multi_reduction <maximumf>, %98, %cst_29 [1] : vector<16x16xf32> to vector<16xf32>
    %100 = vector.shape_cast %99 : vector<16xf32> to vector<16x1xf32>
    %101 = vector.broadcast %100 : vector<16x1xf32> to vector<16x16xf32>
    %102 = arith.subf %98, %101 : vector<16x16xf32>
    %103 = math.exp %102 : vector<16x16xf32>
    %cst_30 = arith.constant dense<0.000000e+00> : vector<16xf32>
    %104 = vector.multi_reduction <add>, %103, %cst_30 [1] : vector<16x16xf32> to vector<16xf32>
    %105 = vector.shape_cast %104 : vector<16xf32> to vector<16x1xf32>
    %106 = tpu.reciprocal %105 {approx = true} : vector<16x1xf32> -> vector<16x1xf32>
    %107 = vector.broadcast %106 : vector<16x1xf32> to vector<16x16xf32>
    %108 = arith.mulf %103, %107 : vector<16x16xf32>
    %109 = arith.truncf %108 : vector<16x16xf32> to vector<16x16xbf16>
    %cst_31 = arith.constant dense<0.000000e+00> : vector<16x32xf32>
    %110 = tpu.matmul %109, %94, %cst_31 {dimension_numbers = #tpu.dot_dimension_numbers<[1], [0], [0], [1], [0, 0, 1, 1], [], []>} : vector<16x16xbf16>, vector<16x32xbf16>, vector<16x32xf32> -> vector<16x32xf32>
    %111 = vector.extract_strided_slice %49 {offsets = [0, 96], sizes = [16, 32], strides = [1, 1]} : vector<16x128xbf16> to vector<16x32xbf16>
    %112 = vector.extract_strided_slice %51 {offsets = [0, 96], sizes = [16, 32], strides = [1, 1]} : vector<16x128xbf16> to vector<16x32xbf16>
    %113 = vector.extract_strided_slice %53 {offsets = [0, 96], sizes = [16, 32], strides = [1, 1]} : vector<16x128xbf16> to vector<16x32xbf16>
    %cst_32 = arith.constant dense<0.000000e+00> : vector<16x16xf32>
    %114 = tpu.matmul %111, %112, %cst_32 {dimension_numbers = #tpu.dot_dimension_numbers<[1], [1], [0], [0], [0, 0, 1, 0], [], []>} : vector<16x32xbf16>, vector<16x32xbf16>, vector<16x16xf32> -> vector<16x16xf32>
    %cst_33 = arith.constant 0.176776692 : f32
    %115 = vector.broadcast %cst_33 : f32 to vector<16x16xf32>
    %116 = arith.mulf %114, %115 : vector<16x16xf32>
    %117 = arith.addf %116, %3 : vector<16x16xf32>
    %cst_34 = arith.constant dense<0xFF800000> : vector<16xf32>
    %118 = vector.multi_reduction <maximumf>, %117, %cst_34 [1] : vector<16x16xf32> to vector<16xf32>
    %119 = vector.shape_cast %118 : vector<16xf32> to vector<16x1xf32>
    %120 = vector.broadcast %119 : vector<16x1xf32> to vector<16x16xf32>
    %121 = arith.subf %117, %120 : vector<16x16xf32>
    %122 = math.exp %121 : vector<16x16xf32>
    %cst_35 = arith.constant dense<0.000000e+00> : vector<16xf32>
    %123 = vector.multi_reduction <add>, %122, %cst_35 [1] : vector<16x16xf32> to vector<16xf32>
    %124 = vector.shape_cast %123 : vector<16xf32> to vector<16x1xf32>
    %125 = tpu.reciprocal %124 {approx = true} : vector<16x1xf32> -> vector<16x1xf32>
    %126 = vector.broadcast %125 : vector<16x1xf32> to vector<16x16xf32>
    %127 = arith.mulf %122, %126 : vector<16x16xf32>
    %128 = arith.truncf %127 : vector<16x16xf32> to vector<16x16xbf16>
    %cst_36 = arith.constant dense<0.000000e+00> : vector<16x32xf32>
    %129 = tpu.matmul %128, %113, %cst_36 {dimension_numbers = #tpu.dot_dimension_numbers<[1], [0], [0], [1], [0, 0, 1, 1], [], []>} : vector<16x16xbf16>, vector<16x32xbf16>, vector<16x32xf32> -> vector<16x32xf32>
    %130 = tpu.concatenate %72, %91, %110, %129 in 1 : vector<16x32xf32>, vector<16x32xf32>, vector<16x32xf32>, vector<16x32xf32> -> vector<16x128xf32>
    %131 = arith.truncf %130 : vector<16x128xf32> to vector<16x128xbf16>
    %cst_37 = arith.constant dense<0.000000e+00> : vector<16x128xf32>
    %132 = tpu.matmul %131, %18, %cst_37 {dimension_numbers = #tpu.dot_dimension_numbers<[1], [0], [0], [1], [0, 0, 1, 1], [], []>} : vector<16x128xbf16>, vector<128x128xbf16>, vector<16x128xf32> -> vector<16x128xf32>
    %133 = arith.addf %4, %132 : vector<16x128xf32>
    %134 = vector.broadcast %12 : vector<1x128xf32> to vector<16x128xf32>
    %135 = arith.addf %133, %134 : vector<16x128xf32>
    %cst_38 = arith.constant dense<0.000000e+00> : vector<16xf32>
    %136 = vector.multi_reduction <add>, %135, %cst_38 [1] : vector<16x128xf32> to vector<16xf32>
    %137 = vector.shape_cast %136 : vector<16xf32> to vector<16x1xf32>
    %cst_39 = arith.constant 1.280000e+02 : f32
    %138 = vector.broadcast %cst_39 : f32 to vector<16x1xf32>
    %139 = arith.divf %137, %138 : vector<16x1xf32>
    %140 = vector.broadcast %139 : vector<16x1xf32> to vector<16x128xf32>
    %141 = arith.subf %135, %140 : vector<16x128xf32>
    %142 = arith.mulf %141, %141 : vector<16x128xf32>
    %cst_40 = arith.constant dense<0.000000e+00> : vector<16xf32>
    %143 = vector.multi_reduction <add>, %142, %cst_40 [1] : vector<16x128xf32> to vector<16xf32>
    %144 = vector.shape_cast %143 : vector<16xf32> to vector<16x1xf32>
    %cst_41 = arith.constant 1.280000e+02 : f32
    %145 = vector.broadcast %cst_41 : f32 to vector<16x1xf32>
    %146 = arith.divf %144, %145 : vector<16x1xf32>
    %147 = vector.broadcast %139 : vector<16x1xf32> to vector<16x128xf32>
    %148 = arith.subf %135, %147 : vector<16x128xf32>
    %cst_42 = arith.constant 9.99999997E-7 : f32
    %149 = vector.broadcast %cst_42 : f32 to vector<16x1xf32>
    %150 = arith.addf %146, %149 : vector<16x1xf32>
    %151 = math.rsqrt %150 : vector<16x1xf32>
    %152 = vector.broadcast %151 : vector<16x1xf32> to vector<16x128xf32>
    %153 = arith.mulf %148, %152 : vector<16x128xf32>
    %154 = vector.broadcast %9 : vector<1x128xf32> to vector<16x128xf32>
    %155 = arith.mulf %153, %154 : vector<16x128xf32>
    %156 = vector.broadcast %10 : vector<1x128xf32> to vector<16x128xf32>
    %157 = arith.addf %155, %156 : vector<16x128xf32>
    %158 = arith.truncf %157 : vector<16x128xf32> to vector<16x128xbf16>
    %cst_43 = arith.constant dense<0.000000e+00> : vector<16x512xf32>
    %159 = tpu.matmul %158, %19, %cst_43 {dimension_numbers = #tpu.dot_dimension_numbers<[1], [0], [0], [1], [0, 0, 1, 1], [], []>} : vector<16x128xbf16>, vector<128x512xbf16>, vector<16x512xf32> -> vector<16x512xf32>
    %160 = vector.broadcast %13 : vector<1x512xf32> to vector<16x512xf32>
    %161 = arith.addf %159, %160 : vector<16x512xf32>
    %cst_44 = arith.constant 5.000000e-01 : f32
    %162 = vector.broadcast %cst_44 : f32 to vector<16x512xf32>
    %163 = arith.mulf %162, %161 : vector<16x512xf32>
    %cst_45 = arith.constant 0.707106769 : f32
    %164 = vector.broadcast %cst_45 : f32 to vector<16x512xf32>
    %165 = arith.mulf %161, %164 : vector<16x512xf32>
    %166 = math.absf %165 : vector<16x512xf32>
    %cst_46 = arith.constant 0.327591091 : f32
    %167 = vector.broadcast %cst_46 : f32 to vector<16x512xf32>
    %168 = arith.mulf %167, %166 : vector<16x512xf32>
    %cst_47 = arith.constant 1.000000e+00 : f32
    %169 = vector.broadcast %cst_47 : f32 to vector<16x512xf32>
    %170 = arith.addf %169, %168 : vector<16x512xf32>
    %171 = tpu.reciprocal %170 {approx = true} : vector<16x512xf32> -> vector<16x512xf32>
    %cst_48 = arith.constant 1.06140542 : f32
    %172 = vector.broadcast %cst_48 : f32 to vector<16x512xf32>
    %173 = arith.mulf %172, %171 : vector<16x512xf32>
    %cst_49 = arith.constant -1.45315206 : f32
    %174 = vector.broadcast %cst_49 : f32 to vector<16x512xf32>
    %175 = arith.addf %173, %174 : vector<16x512xf32>
    %176 = arith.mulf %175, %171 : vector<16x512xf32>
    %cst_50 = arith.constant 1.42141378 : f32
    %177 = vector.broadcast %cst_50 : f32 to vector<16x512xf32>
    %178 = arith.addf %176, %177 : vector<16x512xf32>
    %179 = arith.mulf %178, %171 : vector<16x512xf32>
    %cst_51 = arith.constant -0.284496725 : f32
    %180 = vector.broadcast %cst_51 : f32 to vector<16x512xf32>
    %181 = arith.addf %179, %180 : vector<16x512xf32>
    %182 = arith.mulf %181, %171 : vector<16x512xf32>
    %cst_52 = arith.constant 0.254829586 : f32
    %183 = vector.broadcast %cst_52 : f32 to vector<16x512xf32>
    %184 = arith.addf %182, %183 : vector<16x512xf32>
    %185 = arith.mulf %184, %171 : vector<16x512xf32>
    %cst_53 = arith.constant 0.000000e+00 : f32
    %186 = vector.broadcast %cst_53 : f32 to vector<16x512xf32>
    %187 = arith.subf %186, %166 : vector<16x512xf32>
    %188 = arith.mulf %187, %166 : vector<16x512xf32>
    %189 = math.exp %188 : vector<16x512xf32>
    %190 = arith.mulf %185, %189 : vector<16x512xf32>
    %cst_54 = arith.constant 1.000000e+00 : f32
    %191 = vector.broadcast %cst_54 : f32 to vector<16x512xf32>
    %192 = arith.subf %191, %190 : vector<16x512xf32>
    %cst_55 = arith.constant 0.000000e+00 : f32
    %193 = vector.broadcast %cst_55 : f32 to vector<16x512xf32>
    %194 = arith.cmpf oge, %165, %193 : vector<16x512xf32>
    %cst_56 = arith.constant 0.000000e+00 : f32
    %195 = vector.broadcast %cst_56 : f32 to vector<16x512xf32>
    %196 = arith.subf %195, %192 : vector<16x512xf32>
    %197 = arith.select %194, %192, %196 : vector<16x512xi1>, vector<16x512xf32>
    %cst_57 = arith.constant 1.000000e+00 : f32
    %198 = vector.broadcast %cst_57 : f32 to vector<16x512xf32>
    %199 = arith.addf %198, %197 : vector<16x512xf32>
    %200 = arith.mulf %163, %199 : vector<16x512xf32>
    %201 = arith.truncf %200 : vector<16x512xf32> to vector<16x512xbf16>
    %cst_58 = arith.constant dense<0.000000e+00> : vector<16x128xf32>
    %202 = tpu.matmul %201, %21, %cst_58 {dimension_numbers = #tpu.dot_dimension_numbers<[1], [0], [0], [1], [0, 0, 1, 1], [], []>} : vector<16x512xbf16>, vector<512x128xbf16>, vector<16x128xf32> -> vector<16x128xf32>
    %203 = arith.addf %135, %202 : vector<16x128xf32>
    %204 = vector.broadcast %14 : vector<1x128xf32> to vector<16x128xf32>
    %205 = arith.addf %203, %204 : vector<16x128xf32>
    %c0_59 = arith.constant 0 : index
    %c0_60 = arith.constant 0 : index
    %206 = vector.load %arg10[%c0_59, %c0_60] : memref<16x128xf32, #tpu.memory_space<vmem>>, vector<16x128xf32>
    tpu.vector_store %arg10[%c0_59, %c0_60], %205 {strides = array<i32>} : memref<16x128xf32, #tpu.memory_space<vmem>>, vector<16x128xf32>,
    %c1_i32 = arith.constant 1 : i32
    %207 = arith.cmpi eq, %arg0, %c1_i32 : i32
    %208 = arith.extui %207 : i1 to i32
    %c0_i32_61 = arith.constant 0 : i32
    %209 = arith.cmpi ne, %208, %c0_i32_61 : i32
    scf.if %209 {
      %c0_62 = arith.constant 0 : index
      %c0_63 = arith.constant 0 : index
      %210 = vector.load %arg8[%c0_62, %c0_63] : memref<8x128xf32, #tpu.memory_space<vmem>>, vector<1x128xf32>
      %c1 = arith.constant 1 : index
      %c0_64 = arith.constant 0 : index
      %211 = vector.load %arg8[%c1, %c0_64] : memref<8x128xf32, #tpu.memory_space<vmem>>, vector<1x128xf32>
      %cst_65 = arith.constant dense<0.000000e+00> : vector<16xf32>
      %212 = vector.multi_reduction <add>, %205, %cst_65 [1] : vector<16x128xf32> to vector<16xf32>
      %213 = vector.shape_cast %212 : vector<16xf32> to vector<16x1xf32>
      %cst_66 = arith.constant 1.280000e+02 : f32
      %214 = vector.broadcast %cst_66 : f32 to vector<16x1xf32>
      %215 = arith.divf %213, %214 : vector<16x1xf32>
      %216 = vector.broadcast %215 : vector<16x1xf32> to vector<16x128xf32>
      %217 = arith.subf %205, %216 : vector<16x128xf32>
      %218 = arith.mulf %217, %217 : vector<16x128xf32>
      %cst_67 = arith.constant dense<0.000000e+00> : vector<16xf32>
      %219 = vector.multi_reduction <add>, %218, %cst_67 [1] : vector<16x128xf32> to vector<16xf32>
      %220 = vector.shape_cast %219 : vector<16xf32> to vector<16x1xf32>
      %cst_68 = arith.constant 1.280000e+02 : f32
      %221 = vector.broadcast %cst_68 : f32 to vector<16x1xf32>
      %222 = arith.divf %220, %221 : vector<16x1xf32>
      %223 = vector.broadcast %215 : vector<16x1xf32> to vector<16x128xf32>
      %224 = arith.subf %205, %223 : vector<16x128xf32>
      %cst_69 = arith.constant 9.99999997E-7 : f32
      %225 = vector.broadcast %cst_69 : f32 to vector<16x1xf32>
      %226 = arith.addf %222, %225 : vector<16x1xf32>
      %227 = math.rsqrt %226 : vector<16x1xf32>
      %228 = vector.broadcast %227 : vector<16x1xf32> to vector<16x128xf32>
      %229 = arith.mulf %224, %228 : vector<16x128xf32>
      %230 = vector.broadcast %210 : vector<1x128xf32> to vector<16x128xf32>
      %231 = arith.mulf %229, %230 : vector<16x128xf32>
      %232 = vector.broadcast %211 : vector<1x128xf32> to vector<16x128xf32>
      %233 = arith.addf %231, %232 : vector<16x128xf32>
      %234 = arith.truncf %233 : vector<16x128xf32> to vector<16x128xbf16>
      %c0_70 = arith.constant 0 : index
      %c0_71 = arith.constant 0 : index
      %235 = vector.load %arg7[%c0_70, %c0_71] : memref<128x128xbf16, #tpu.memory_space<vmem>>, vector<128x128xbf16>
      %cst_72 = arith.constant dense<0.000000e+00> : vector<16x128xf32>
      %236 = tpu.matmul %234, %235, %cst_72 {dimension_numbers = #tpu.dot_dimension_numbers<[1], [0], [0], [1], [0, 0, 1, 1], [], []>} : vector<16x128xbf16>, vector<128x128xbf16>, vector<16x128xf32> -> vector<16x128xf32>
      %c2 = arith.constant 2 : index
      %c0_73 = arith.constant 0 : index
      %237 = vector.load %arg8[%c2, %c0_73] : memref<8x128xf32, #tpu.memory_space<vmem>>, vector<1x128xf32>
      %238 = vector.broadcast %237 : vector<1x128xf32> to vector<16x128xf32>
      %239 = arith.addf %236, %238 : vector<16x128xf32>
      %c0_74 = arith.constant 0 : index
      %c0_75 = arith.constant 0 : index
      %240 = vector.load %arg9[%c0_74, %c0_75] : memref<16x128xf32, #tpu.memory_space<vmem>>, vector<16x128xf32>
      tpu.vector_store %arg9[%c0_74, %c0_75], %239 {strides = array<i32>} : memref<16x128xf32, #tpu.memory_space<vmem>>, vector<16x128xf32>,
    } else {
    }
    return
  }
  func.func @transform_0(%arg0: i32) -> (i32, i32) {
    %c0_i32 = arith.constant 0 : i32
    %c0_i32_0 = arith.constant 0 : i32
    %c0_i32_1 = arith.constant 0 : i32
    return %c0_i32, %c0_i32_0 : i32, i32
  }
  func.func @transform_1(%arg0: i32) -> (i32, i32) {
    %c0_i32 = arith.constant 0 : i32
    %c0_i32_0 = arith.constant 0 : i32
    %c0_i32_1 = arith.constant 0 : i32
    return %c0_i32, %c0_i32_0 : i32, i32
  }
  func.func @transform_2(%arg0: i32) -> (i32, i32) {
    %c0_i32 = arith.constant 0 : i32
    %c0_i32_0 = arith.constant 0 : i32
    %c0_i32_1 = arith.constant 0 : i32
    return %c0_i32, %c0_i32_0 : i32, i32
  }
  func.func @transform_3(%arg0: i32) -> (i32, i32, i32) {
    %c0_i32 = arith.constant 0 : i32
    %c0_i32_0 = arith.constant 0 : i32
    %c0_i32_1 = arith.constant 0 : i32
    return %arg0, %c0_i32, %c0_i32_0 : i32, i32, i32
  }
  func.func @transform_4(%arg0: i32) -> (i32, i32, i32) {
    %c0_i32 = arith.constant 0 : i32
    %c0_i32_0 = arith.constant 0 : i32
    %c0_i32_1 = arith.constant 0 : i32
    return %arg0, %c0_i32, %c0_i32_0 : i32, i32, i32
  }
  func.func @transform_5(%arg0: i32) -> (i32, i32, i32) {
    %c0_i32 = arith.constant 0 : i32
    %c0_i32_0 = arith.constant 0 : i32
    %c0_i32_1 = arith.constant 0 : i32
    return %arg0, %c0_i32, %c0_i32_0 : i32, i32, i32
  }
  func.func @transform_6(%arg0: i32) -> (i32, i32) {
    %c0_i32 = arith.constant 0 : i32
    %c0_i32_0 = arith.constant 0 : i32
    %c0_i32_1 = arith.constant 0 : i32
    return %c0_i32, %c0_i32_0 : i32, i32
  }
  func.func @transform_7(%arg0: i32) -> (i32, i32) {
    %c0_i32 = arith.constant 0 : i32
    %c0_i32_0 = arith.constant 0 : i32
    %c0_i32_1 = arith.constant 0 : i32
    return %c0_i32, %c0_i32_0 : i32, i32
  }
  func.func @transform_8(%arg0: i32) -> (i32, i32) {
    %c0_i32 = arith.constant 0 : i32
    %c0_i32_0 = arith.constant 0 : i32
    %c0_i32_1 = arith.constant 0 : i32
    return %c0_i32, %c0_i32_0 : i32, i32
  }
}

</mosaic_0001>

<bundles_post_ra>
// kernel: vit_forward.1
= control target key start
LH: loop header
LB: loop body
LE: loop exit
PB: predicated region body
PF: predicated region fallthrough
CT: control target
= control target key end

     0   :  { %13 = vsyncpa [#allocation4], 0  ;;  %s4542_s0 = inlined_call_operand.vmem [shape: bf16[16,768], index: 0, kind: input, shape index: {}]   ;;  %s4543_s1 = inlined_call_operand.hbm [shape: bf16[768,128], index: 1, kind: input, shape index: {}]   ;;  %s4544_s2 = inlined_call_operand.vmem [shape: f32[16,256], index: 2, kind: input, shape index: {}]   ;;  %s4545_s3 = inlined_call_operand.vmem [shape: bf16[2,128,1024], index: 3, kind: input, shape index: {}]   ;;  %s4546_s4 = inlined_call_operand.hbm [shape: bf16[2,512,128], index: 4, kind: input, shape index: {}]   ;;  %s4547_s5 = inlined_call_operand.vmem [shape: f32[2,8,512], index: 5, kind: input, shape index: {}]   ;;  %s4548_s6 = inlined_call_operand.vmem [shape: bf16[128,128], index: 6, kind: input, shape index: {}]   ;;  %s4549_s7 = inlined_call_operand.vmem [shape: f32[8,128], index: 7, kind: input, shape index: {}]   ;;  %s4550_s8 = inlined_call_operand.vmem [shape: f32[16,128], index: 8, kind: output, shape index: {}]  }
   0x1   :  { %14 = vsyncpa [#allocation6], 0 }
   0x2   :  { %16 = vsyncpa [#allocation6 + $0x1], 0  ;;  %s3805_s27 = smov 0   ;;  %s3807_s28 = smov 0  }
   0x3   :  { %s3809_s29 = smov 0   ;;  %s3811_s30 = smov 0  }
   0x4 LB: > { %s3824_s9 = sadd.s32 4294967295, %s3746_s30   ;;  %p131_p0 = scmp.ne.s32.totalorder %s3738_s28, %s3734_s27  ;;  %s3746_s30 = sphi %s3811_s30, %s4566_s30   ;;  %s3742_s29 = sphi %s3809_s29, %s4565_s29   ;;  %s3738_s28 = sphi %s3807_s28, %s4564_s28   ;;  %s3734_s27 = sphi %s3805_s27, %s4563_s27  }
   0x5   : > { %p4551_p1 = scmp.eq.s32.totalorder %s3824_s9, 0  ;;  %p2951_p2 = scmp.ge.s32.totalorder %s3746_s30, 1 }
   0x6   : > { %p231_p3 = scmp.lt.s32.totalorder %s3746_s30, 3  ;;  %s3748_s12 = smov [#allocation3]  }
   0x7   : > { %p3833_p5 = por %p4551_p1, %p131_p0  ;;  %s246_s13 = sshll.u32 %s3748_s12, 4  ;;  %s247_s13 = int_to_ptr.vmem [resolvable:$true] %s246_s13 }
   0x8   : > { %p3837_p6 = pnand %p2951_p2, %p231_p3  ;;  %s3850_s15 = sadd.s32 1, %s3746_s30  }
   0x9   : > { %s4554_s10 = scalar_select %p3833_p5, 1, 0 }
   0xa   : > { %s4555_s11 = scalar_select %p3837_p6, 1, 0 }
   0xb   : > { %p3407_p7 = pneg %p3837_p6  ;;  %s118_s16 = sadd.s32 1, %s3742_s29 }
   0xc   : > { %s115_s17 = ssub.s32 %s3746_s30, %s3850_s15  ;;  %s3650_s20 = scalar_lea.hbm %s4543_s1, 6144 }
   0xd   : > { %p3845_p8 = pnand %p3407_p7, %p4551_p1  ;;  %p3651_p9 = scmp.ne.s32.totalorder %s4543_s1, %s3650_s20 }
   0xe   : > { %p3657_p13 = scmp.lt.u32.totalorder %s3650_s20, %s4543_s1 }
   0xf   : > { %p3652_p10 = pneg %p3845_p8 }
  0x11   : > { %p3653_p11 = pnand %p3652_p10, %p3651_p9 }
  0x13   : > { %p3654_p12 = pneg %p3653_p11 }
  0x15   : > { %p3659_p0 = pnand %p3657_p13, %p3654_p12 }
  0x17   : > { %3662 = shalt.err (!%p3659_p0)
}
  0x18   : > { %s3663_s25 = scalar_lea.vmem %s247_s13, 6144  ;;  %p3671_p4 = scmp.lt.s32.totalorder %s247_s13, %s247_s13 }
  0x19   : > { %p3664_p2 = scmp.ne.s32.totalorder %s247_s13, %s3663_s25  ;;  %p3672_p1 = scmp.lt.s32.totalorder %s3663_s25, %s3663_s25 }
  0x1b   : > { %p3666_p3 = pnand %p3664_p2, %p3652_p10  ;;  %p3673_p5 = por %p3672_p1, %p3671_p4 }
  0x1d   : > { %p3667_p7 = pneg %p3666_p3 }
  0x1f   : > { %p3674_p6 = pnand %p3673_p5, %p3667_p7 }
  0x21   : > { %3677 = shalt.err (!%p3674_p6)
}
  0x22   : > { %s3749_s26 = smov 64   ;;  %s3750_s27 = smov 4  }
  0x23   : > { %3410 = dma.hbm_to_vmem [thread:$0]  (!%p3845_p8), %s4543_s1, 6144, %s247_s13, [#allocation4], %s3749_s26, %s3749_s26, %s3750_s27  }
  0x24   : > { %p116_p1 = scmp.eq.s32.totalorder %s115_s17, 0  ;;  %p125_p4 = scmp.ne.s32.totalorder %s3742_s29, %s3738_s28 }
  0x25   : > { %p126_p5 = scmp.eq.s32.totalorder %s3746_s30, 0  ;;  %p3416_p6 = scmp.lt.s32.totalorder %s3746_s30, 2 }
  0x26   : > { %s3879_s19 = scalar_select %p116_p1, %s3742_s29, %s118_s16  }
  0x27   : > { %p127_p9 = por %p126_p5, %p125_p4  ;;  %s277_s20 = sand.u32 1, %s3742_s29  }
  0x28   : > { %s2954_s21 = sshll.u32 %s277_s20, 8  ;;  %s3137_s22 = sshll.u32 %s3746_s30, 12 }
  0x29   : > { %s3886_s14 = scalar_lea.hbm %s4546_s4, %s3137_s22  ;;  %s281_s13 = scalar_lea.vmem [#allocation5], %s2954_s21 }
  0x2a   : > { %s288_s17 = sshll.u32 %s281_s13, 4  ;;  %p3890_p8 = pnand %p3416_p6, %p127_p9  ;;  %s3888_s17 = int_to_ptr.vmem [resolvable:$true] %s288_s17 }
  0x2b   : > { %s3894_s30 = scalar_lea.sflag [#allocation6], %s277_s20  ;;  %s3678_s25 = scalar_lea.hbm %s3886_s14, 4096 }
  0x2c   : > { %p3679_p10 = scmp.ne.s32.totalorder %s3886_s14, %s3678_s25  ;;  %p3680_p11 = pneg %p3890_p8 }
  0x2d   : > { %s3683_s21 = scalar_lea.hbm %s4546_s4, 8192  ;;  %p3684_p0 = scmp.lt.u32.totalorder %s3886_s14, %s4546_s4 }
  0x2e   : > { %p3681_p12 = pnand %p3680_p11, %p3679_p10  ;;  %p3685_p2 = scmp.lt.u32.totalorder %s3683_s21, %s3678_s25 }
  0x2f   : > { %p3687_p7 = scmp.lt.u32.totalorder %s3678_s25, %s3886_s14 }
  0x30   : > { %p3682_p13 = pneg %p3681_p12  ;;  %p3686_p3 = por %p3685_p2, %p3684_p0 }
  0x32   : > { %p3688_p1 = por %p3687_p7, %p3686_p3 }
  0x34   : > { %p3689_p4 = pnand %p3688_p1, %p3682_p13 }
  0x36   : > { %3692 = shalt.err (!%p3689_p4)
}
  0x37   : > { %s3693_s20 = scalar_lea.vmem %s3888_s17, 4096  ;;  %s3751_s24 = smov [#allocation5]  }
  0x38   : > { %p3694_p5 = scmp.ne.s32.totalorder %s3888_s17, %s3693_s20  ;;  %s3698_s13 = sshll.u32 %s3751_s24, 4  ;;  %s3699_s13 = int_to_ptr.vmem [resolvable:$false] %s3698_s13 }
  0x39   : > { %s3700_s12 = scalar_lea.vmem %s3699_s13, 8192  ;;  %p3701_p10 = scmp.lt.s32.totalorder %s3888_s17, %s3699_s13 }
  0x3a   : > { %p3696_p6 = pnand %p3694_p5, %p3680_p11  ;;  %p3702_p12 = scmp.lt.s32.totalorder %s3700_s12, %s3693_s20 }
  0x3c   : > { %p3697_p9 = pneg %p3696_p6  ;;  %p3703_p0 = por %p3702_p12, %p3701_p10 }
  0x3e   : > { %p3704_p2 = pnand %p3703_p0, %p3697_p9 }
  0x40   : > { %3707 = shalt.err (!%p3704_p2)
}
  0x41   : > { %3414 = dma.hbm_to_vmem [thread:$0]  (!%p3890_p8), %s3886_s14, 4096, %s3888_s17, %s3894_s30, %s3749_s26, %s3749_s26, %s3750_s27  }
  0x42   : > { %p4558_p11 = scmp.ne.s32.totalorder %s4555_s11, 0 }
  0x43   : > { %p4559_p13 = scmp.eq.s32.totalorder (!%p4558_p11), %s3824_s9, 0 }
  0x44   : > { %308 = sbr.rel (%p4558_p11) target bundleno = 3926 (0xf56), region = 52 }
  0x4b   : > { %3725 = dma.done.wait (%p4559_p13), [#allocation4], 6144   ;;  %p4560_p3 = pmov %p4559_p13 }
  0x4c   : > { %s314_s25 = sand.u32 1, %s3738_s28   ;;  %p4561_p7 = scmp.ne.s32.totalorder %s4554_s10, 0 }
  0x4d   : > { %3727 = vsyncadd (%p4560_p3), [#allocation4], 4294961152  ;;  %s2959_s16 = sshll.u32 %s314_s25, 8  ;;  %s315_s18 = scalar_lea.sflag [#allocation6], %s314_s25 }
  0x4e   : > { %s3932_s21 = scalar_lea.vmem [#allocation5], %s2959_s16 }
  0x4f   : > { %3729 = dma.done.wait (%p4561_p7), %s315_s18, 4096  }
  0x50   : > { %3731 = vsyncadd (%p4561_p7), %s315_s18, 4294963200  ;;  %p356_p8 = scmp.lt.s32.totalorder %s3824_s9, 1  ;;  %p4562_p1 = scmp.ne.s32.totalorder %s3824_s9, 0 }
  0x51   : > { %v3461_v0 = vld [vmem:[#allocation3 + $0x40] sm:$0xff] (!%p4562_p1)   ;;  %v3465_v4 = vld [vmem:[#allocation3 + $0x48] sm:$0xff] (!%p4562_p1)   ;;  %v3469_v8 = vld [vmem:[#allocation3 + $0x50] sm:$0xff] (!%p4562_p1)  }
  0x52   : > { %s357_s11 = scalar_select %p356_p8, %s3824_s9, 1 }
  0x53   : > { %370 = sbr.rel (%p4562_p1) target bundleno = 367 (0x16f), region = 64  ;;  %v3462_v1 = vld [vmem:[#allocation3] sm:$0xff] (!%p4562_p1)   ;;  %3140 = vmatprep.subr.bf16.mxu0 (!%p4562_p1), %v3461_v0  ;;  %v3466_v5 = vld [vmem:[#allocation3 + $0x8] sm:$0xff] (!%p4562_p1)   ;;  %v3470_v9 = vld [vmem:[#allocation3 + $0x10] sm:$0xff] (!%p4562_p1)  }
  0x54   : > { %s3138_s26 = sshll.u32 %s357_s11, 9  ;;  %s3139_s27 = sshll.u32 %s357_s11, 5  ;;  %v3463_v2 = vld [vmem:[#allocation3 + $0xc0] sm:$0xff] (!%p4562_p1)   ;;  %3141 = vmatpush3.bf16.msra.mxu0 (!%p4562_p1), %v3462_v1  ;;  %v3467_v6 = vld [vmem:[#allocation3 + $0xc8] sm:$0xff] (!%p4562_p1)   ;;  %v3471_v10 = vld [vmem:[#allocation3 + $0xd0] sm:$0xff] (!%p4562_p1)  }
  0x55   : > { %s3943_s30 = scalar_lea.vmem %s4545_s3, %s3138_s26  ;;  %s3948_s20 = scalar_lea.vmem %s4547_s5, %s3139_s27  ;;  %v3464_v3 = vld [vmem:[#allocation3 + $0x80] sm:$0xff] (!%p4562_p1)   ;;  %3162 = vmatprep.subr.bf16.mxu1 (!%p4562_p1), %v3463_v2  ;;  %3142 = vmatprep.subr.bf16.mxu0 (!%p4562_p1), %v3465_v4  ;;  %v3468_v7 = vld [vmem:[#allocation3 + $0x88] sm:$0xff] (!%p4562_p1)   ;;  %v3472_v11 = vld [vmem:[#allocation3 + $0x90] sm:$0xff] (!%p4562_p1)  }
  0x56   : > { %3163 = vmatpush3.bf16.msra.mxu1 (!%p4562_p1), %v3464_v3  ;;  %v3473_v12 = vld [vmem:[#allocation3 + $0x58] sm:$0xff] (!%p4562_p1)   ;;  %v3477_v16 = vld [vmem:[#allocation3 + $0x60] sm:$0xff] (!%p4562_p1)   ;;  %v3481_v20 = vld [vmem:[#allocation3 + $0x68] sm:$0xff] (!%p4562_p1)  }
  0x57   : > { %3164 = vmatprep.subr.bf16.mxu1 (!%p4562_p1), %v3467_v6  ;;  %v3474_v13 = vld [vmem:[#allocation3 + $0x18] sm:$0xff] (!%p4562_p1)   ;;  %v3478_v17 = vld [vmem:[#allocation3 + $0x20] sm:$0xff] (!%p4562_p1)   ;;  %v3482_v21 = vld [vmem:[#allocation3 + $0x28] sm:$0xff] (!%p4562_p1)  }
  0x58   : > { %3143 = vmatpush3.bf16.msra.mxu0 (!%p4562_p1), %v3466_v5  ;;  %v3475_v14 = vld [vmem:[#allocation3 + $0xd8] sm:$0xff] (!%p4562_p1)   ;;  %v3479_v18 = vld [vmem:[#allocation3 + $0xe0] sm:$0xff] (!%p4562_p1)   ;;  %v3483_v22 = vld [vmem:[#allocation3 + $0xe8] sm:$0xff] (!%p4562_p1)  }
  0x59   : > { %3144 = vmatprep.subr.bf16.mxu0 (!%p4562_p1), %v3469_v8  ;;  %v3476_v15 = vld [vmem:[#allocation3 + $0x98] sm:$0xff] (!%p4562_p1)   ;;  %v3480_v19 = vld [vmem:[#allocation3 + $0xa0] sm:$0xff] (!%p4562_p1)   ;;  %v3484_v23 = vld [vmem:[#allocation3 + $0xa8] sm:$0xff] (!%p4562_p1)  }
  0x5a   : > { %3165 = vmatpush3.bf16.msra.mxu1 %v3468_v7  ;;  %v3485_v24 = vld [vmem:[#allocation3 + $0x70] sm:$0xff]   ;;  %v3489_v28 = vld [vmem:[#allocation3 + $0x78] sm:$0xff]   ;;  %v3496_v34 = vld [vmem:[#allocation3 + $0x140] sm:$0xff]  }
  0x5b   : > { %3166 = vmatprep.subr.bf16.mxu1 %v3471_v10  ;;  %v3486_v25 = vld [vmem:[#allocation3 + $0x30] sm:$0xff]   ;;  %v3490_v29 = vld [vmem:[#allocation3 + $0x38] sm:$0xff]   ;;  %v3500_v37 = vld [vmem:[#allocation3 + $0x100] sm:$0xff]  }
  0x5c   : > { %3145 = vmatpush3.bf16.msra.mxu0 %v3470_v9  ;;  %v3487_v26 = vld [vmem:[#allocation3 + $0xf0] sm:$0xff]   ;;  %v3491_v30 = vld [vmem:[#allocation3 + $0xf8] sm:$0xff]   ;;  %v3501_v38 = vld [vmem:[#allocation3 + $0x148] sm:$0xff]  }
  0x5d   : > { %3146 = vmatprep.subr.bf16.mxu0 %v3473_v12  ;;  %v3488_v27 = vld [vmem:[#allocation3 + $0xb0] sm:$0xff]   ;;  %v3495_v33 = vld [vmem:[#allocation3 + $0xb8] sm:$0xff]   ;;  %v3502_v39 = vld [vmem:[#allocation3 + $0x108] sm:$0xff]  }
  0x5e   : > { %3167 = vmatpush3.bf16.msra.mxu1 %v3472_v11  ;;  %v3492_v31 = vld [vmem:[%s4542_s0] ss:$24 sps:$4 sm:$0xff]   ;;  %v3494_v32 = vld [vmem:[%s4542_s0 + $0x4] ss:$24 sps:$4 sm:$0xff]   ;;  %v3505_v42 = vld [vmem:[#allocation3 + $0x158] sm:$0xff]  }
  0x5f   : > { %3168 = vmatprep.subr.bf16.mxu1 %v3475_v14  ;;  %825 = vmatprep.mubr.bf16.mxu0 %v3494_v32  ;;  %v3497_v35 = vld [vmem:[%s4542_s0 + $0x8] ss:$24 sps:$4 sm:$0xff]   ;;  %v3499_v36 = vld [vmem:[%s4542_s0 + $0xc] ss:$24 sps:$4 sm:$0xff]   ;;  %v3507_v44 = vld [vmem:[#allocation3 + $0x160] sm:$0xff]  }
  0x60   : > { %3147 = vmatpush3.bf16.msra.mxu0 %v3474_v13  ;;  %866 = vmatprep.mubr.bf16.mxu1 %v3499_v36  ;;  %v3503_v40 = vld [vmem:[#allocation3 + $0x150] sm:$0xff]   ;;  %v3506_v43 = vld [vmem:[#allocation3 + $0x118] sm:$0xff]   ;;  %v3508_v45 = vld [vmem:[#allocation3 + $0x120] sm:$0xff]  }
  0x61   : > { %3148 = vmatprep.subr.bf16.mxu0 %v3477_v16  ;;  %v3504_v41 = vld [vmem:[#allocation3 + $0x110] sm:$0xff]   ;;  %v3509_v46 = vld [vmem:[#allocation3 + $0x168] sm:$0xff]   ;;  %v3517_v47 = vld [vmem:[%s4542_s0 + $0x14] ss:$24 sps:$4 sm:$0xff]  }
  0x62   : > { %3169 = vmatpush3.bf16.msra.mxu1 %v3476_v15  ;;  %v3510_v48 = vld [vmem:[#allocation3 + $0x128] sm:$0xff]   ;;  %v3511_v49 = vld [vmem:[#allocation3 + $0x170] sm:$0xff]   ;;  %v3513_v51 = vld [vmem:[#allocation3 + $0x178] sm:$0xff]  }
  0x63   : > { %3170 = vmatprep.subr.bf16.mxu1 %v3479_v18  ;;  %v3512_v50 = vld [vmem:[#allocation3 + $0x130] sm:$0xff]   ;;  %v3514_v52 = vld [vmem:[#allocation3 + $0x138] sm:$0xff]   ;;  %v474_v60 = vld [vmem:[%s4544_s2 + $0x10] sm:$0xff] }
  0x64   : > { %3149 = vmatpush3.bf16.msra.mxu0 %v3478_v17  ;;  %v3515_v53 = vld [vmem:[%s4542_s0 + $0x10] ss:$24 sps:$4 sm:$0xff]   ;;  %v473_v55 = vld [vmem:[%s4544_s2] sm:$0xff] }
  0x65   : > { %3150 = vmatprep.subr.bf16.mxu0 %v3481_v20 }
  0x66   : > { %3171 = vmatpush3.bf16.msra.mxu1 %v3480_v19 }
  0x67   : > { %3172 = vmatprep.subr.bf16.mxu1 %v3483_v22 }
  0x68   : > { %3151 = vmatpush3.bf16.msra.mxu0 %v3482_v21 }
  0x69   : > { %3152 = vmatprep.subr.bf16.mxu0 %v3485_v24 }
  0x6a   : > { %3173 = vmatpush3.bf16.msra.mxu1 %v3484_v23 }
  0x6b   : > { %3174 = vmatprep.subr.bf16.mxu1 %v3487_v26 }
  0x6c   : > { %3153 = vmatpush3.bf16.msra.mxu0 %v3486_v25 }
  0x6d   : > { %3154 = vmatprep.subr.bf16.mxu0 %v3489_v28 }
  0x6e   : > { %3175 = vmatpush3.bf16.msra.mxu1 %v3488_v27 }
  0x6f   : > { %3176 = vmatprep.subr.bf16.mxu1 %v3491_v30 }
  0x70   : > { %3155 = vmatpush3.bf16.msra.mxu0 %v3490_v29 }
  0x71   : > { %3184 = vmatprep.subr.bf16.mxu0 %v3496_v34 }
  0x72   : > { %3177 = vmatpush3.bf16.msra.mxu1 %v3495_v33 }
  0x73   : > { %826 = vmatmul.mubr.bf16.vlgmr.msra.gmra.mrb[0].mxu0 %v3492_v31 }
  0x74   : > { %3185 = vmatpush3.bf16.msra.mxu0 %v3500_v37  ;;  %907 = vmatprep.mubr.bf16.mxu0 %v3517_v47 }
  0x75   : > { %867 = vmatmul.mubr.bf16.vlgmr.msra.gmra.mrb[0].mxu1 %v3497_v35  ;;  %3186 = vmatprep.subr.bf16.mxu0 %v3501_v38 }
  0x78   : > { %3187 = vmatpush3.bf16.msra.mxu0 %v3502_v39 }
  0x79   : > { %3188 = vmatprep.subr.bf16.mxu0 %v3503_v40 }
  0x7c   : > { %3189 = vmatpush3.bf16.msra.mxu0 %v3504_v41 }
  0x7d   : > { %3190 = vmatprep.subr.bf16.mxu0 %v3505_v42 }
  0x80   : > { %3191 = vmatpush3.bf16.msra.mxu0 %v3506_v43 }
  0x81   : > { %3192 = vmatprep.subr.bf16.mxu0 %v3507_v44 }
  0x84   : > { %3193 = vmatpush3.bf16.msra.mxu0 %v3508_v45 }
  0x85   : > { %3194 = vmatprep.subr.bf16.mxu0 %v3509_v46 }
  0x88   : > { %3195 = vmatpush3.bf16.msra.mxu0 %v3510_v48 }
  0x89   : > { %3196 = vmatprep.subr.bf16.mxu0 %v3511_v49 }
  0x8c   : > { %3197 = vmatpush3.bf16.msra.mxu0 %v3512_v50 }
  0x8d   : > { %3198 = vmatprep.subr.bf16.mxu0 %v3513_v51 }
  0x90   : > { %3199 = vmatpush3.bf16.msra.mxu0 %v3514_v52 }
  0x93   : > { %908 = vmatmul.mubr.bf16.vlgmr.msra.gmra.mrb[4].mxu0 %v3515_v53 }
 0x146   : > { %v3156_v54 = vpop.f32.mrb[0].mxu0 }
 0x147   : > { %v3157_v56 = vpop.f32.mrb[1].mxu0 }
 0x148   : > { %v3158_v57 = vadd.f32 %v3157_v56, %v3156_v54  ;;  %v3159_v58 = vpop.f32.mrb[2].mxu0  ;;  %v3178_v59 = vpop.f32.mrb[0].mxu1 }
 0x149   : > { %v3160_v61 = vpop.f32.mrb[3].mxu0  ;;  %v3179_v0 = vpop.f32.mrb[1].mxu1 }
 0x14a   : > { %v828_v62 = vadd.f32 %v3158_v57, %v473_v55  ;;  %v3161_v63 = vadd.f32 %v3160_v61, %v3159_v58  ;;  %v3180_v1 = vadd.f32 %v3179_v0, %v3178_v59  ;;  %v3181_v2 = vpop.f32.mrb[2].mxu1 }
 0x14b   : > { %v3182_v4 = vpop.f32.mrb[3].mxu1 }
 0x14c   : > { %v831_v3 = vadd.f32 %v3161_v63, %v474_v60  ;;  %v869_v5 = vadd.f32 %v3180_v1, %v828_v62  ;;  %v3183_v6 = vadd.f32 %v3182_v4, %v3181_v2 }
 0x14e   : > { %v872_v7 = vadd.f32 %v3183_v6, %v831_v3 }
 0x166   : > { %v3200_v8 = vpop.f32.mrb[4].mxu0 }
 0x167   : > { %v3201_v9 = vpop.f32.mrb[5].mxu0 }
 0x168   : > { %v3202_v10 = vadd.f32 %v3201_v9, %v3200_v8  ;;  %v3203_v11 = vpop.f32.mrb[6].mxu0 }
 0x169   : > { %v3204_v12 = vpop.f32.mrb[7].mxu0 }
 0x16a   : > { %v910_v13 = vadd.f32 %v3202_v10, %v869_v5  ;;  %v3205_v14 = vadd.f32 %v3204_v12, %v3203_v11 }
 0x16c   : > { %916 = vst [vmem:[#allocation2] sm:$0xff] %v910_v13  ;;  %v913_v15 = vadd.f32 %v3205_v14, %v872_v7 }
 0x16e   : > { %917 = vst [vmem:[#allocation2 + $0x8] sm:$0xff] %v913_v15 }
 0x16f PF: > { %v926_v18 = vld [vmem:[%s3943_s30] sm:$0xff]  ;;  %v3985_v20 = vld [vmem:[%s3943_s30 + $0x8] sm:$0xff]  ;;  %v3752_v22 = vmov 0.0   ;;  %v3753_v3 = vmov 0   ;;  %vm3754_vm0 = vmmov 0   ;;  %vm1317_vm1 = vcmask 261120  }
 0x170   : > { %v930_v19 = vld [vmem:[%s3943_s30 + $0x20] sm:$0xff]  ;;  %3293 = vmatprep.subr.bf16.mxu1 %v3752_v22  ;;  %v3989_v24 = vld [vmem:[%s3943_s30 + $0x28] sm:$0xff]  ;;  %1262 = vmatprep.mubr.bf16.mxu0 %v3753_v3  ;;  %vm1369_vm2 = vcmask 130048   ;;  %s3755_s18 = smov 96   ;;  %s3756_s11 = smov 64   ;;  %vm1841_vm3 = vcmask 523264  }
 0x171   : > { %v3020_v21 = vcombine.high %v926_v18, %v930_v19  ;;  %v3019_v23 = vcombine.low %v926_v18, %v930_v19  ;;  %v934_v25 = vld [vmem:[%s3943_s30 + $0x40] sm:$0xff]  ;;  %v3021_v27 = vcombine.low %v3985_v20, %v3989_v24  ;;  %v3051_v28 = vcombine.high %v3985_v20, %v3989_v24  ;;  %v4009_v38 = vld [vmem:[%s3943_s30 + $0x48] sm:$0xff]  ;;  %3309 = vmatprep.mubr.msk.bf16.mxu1 %vm3754_vm0, %v3752_v22  ;;  %s3757_s26 = smov 32   ;;  %p3123_p4 = scmp.ne.s32.totalorder %s3824_s9, 1 }
 0x172   : > { %v938_v26 = vld [vmem:[%s3943_s30 + $0x60] sm:$0xff]  ;;  %v4012_v39 = vld [vmem:[%s3943_s30 + $0x68] sm:$0xff]  ;;  %vm1844_vm4 = vcmask 785408   ;;  %vm3759_vm13 = vmmov (!%p3123_p4), 0  }
 0x173   : > { %v3976_v16 = vld [vmem:[#allocation2] sm:$0xff]  ;;  %v3023_v29 = vcombine.high %v934_v25, %v938_v26  ;;  %1230 = vmatprep.subr.bf16.mxu0 %v3020_v21  ;;  %3294 = vmatpush3.bf16.msra.mxu1 %v3021_v27  ;;  %v3022_v40 = vcombine.low %v934_v25, %v938_v26  ;;  %v3024_v41 = vcombine.low %v4009_v38, %v4012_v39  ;;  %v4020_v45 = vld [vmem:[%s3943_s30 + $0x88] sm:$0xff] }
 0x174   : > { %1054 = vadd.xlane.f32.xlu0 %v3976_v16  ;;  %1231 = vmatpush1.bf16.msra.mxu0 %v3019_v23  ;;  %v942_v42 = vld [vmem:[%s3943_s30 + $0x80] sm:$0xff]  ;;  %v4023_v46 = vld [vmem:[%s3943_s30 + $0xa8] sm:$0xff]  ;;  %v3052_v49 = vcombine.high %v4009_v38, %v4012_v39 }
 0x175   : > { %v3978_v17 = vld [vmem:[#allocation2 + $0x8] sm:$0xff]  ;;  %1232 = vmatprep.subr.bf16.mxu0 %v3023_v29  ;;  %3295 = vmatprep.subr.bf16.mxu1 %v3752_v22  ;;  %v946_v43 = vld [vmem:[%s3943_s30 + $0xa0] sm:$0xff]  ;;  %v3027_v48 = vcombine.low %v4020_v45, %v4023_v46  ;;  %v3053_v57 = vcombine.high %v4020_v45, %v4023_v46 }
 0x176   : > { %v3026_v44 = vcombine.high %v942_v42, %v946_v43  ;;  %v3025_v47 = vcombine.low %v942_v42, %v946_v43  ;;  %v950_v50 = vld [vmem:[%s3943_s30 + $0xc0] sm:$0xff]  ;;  %v4033_v53 = vld [vmem:[%s3943_s30 + $0xc8] sm:$0xff]  ;;  %v1077_v42 = vlaneseq }
 0x177   : > { %3296 = vmatpush3.bf16.msra.mxu1 %v3024_v41  ;;  %v954_v51 = vld [vmem:[%s3943_s30 + $0xe0] sm:$0xff]  ;;  %v4036_v54 = vld [vmem:[%s3943_s30 + $0xe8] sm:$0xff] }
 0x178   : > { %1056 = vadd.xlane.f32.xlu0 %v3978_v17  ;;  %1233 = vmatpush1.bf16.msra.mxu0 %v3022_v40  ;;  %v3029_v52 = vcombine.high %v950_v50, %v954_v51  ;;  %v3028_v55 = vcombine.low %v950_v50, %v954_v51  ;;  %v3030_v56 = vcombine.low %v4033_v53, %v4036_v54  ;;  %v958_v59 = vld [vmem:[%s3943_s30 + $0x100] sm:$0xff]  ;;  %v4047_v61 = vld [vmem:[%s3943_s30 + $0x108] sm:$0xff] }
 0x179   : > { %3297 = vmatprep.subr.bf16.mxu1 %v3752_v22  ;;  %1234 = vmatprep.subr.bf16.mxu0 %v3026_v44  ;;  %v3054_v58 = vcombine.high %v4033_v53, %v4036_v54  ;;  %v962_v60 = vld [vmem:[%s3943_s30 + $0x120] sm:$0xff]  ;;  %v4051_v0 = vld [vmem:[%s3943_s30 + $0x128] sm:$0xff] }
 0x17a   : > { %v3032_v62 = vcombine.high %v958_v59, %v962_v60  ;;  %v3031_v63 = vcombine.low %v958_v59, %v962_v60  ;;  %v966_v1 = vld [vmem:[%s3943_s30 + $0x140] sm:$0xff]  ;;  %v3033_v4 = vcombine.low %v4047_v61, %v4051_v0  ;;  %v3055_v5 = vcombine.high %v4047_v61, %v4051_v0  ;;  %v4061_v7 = vld [vmem:[%s3943_s30 + $0x148] sm:$0xff] }
 0x17b   : > { %3298 = vmatpush3.bf16.msra.mxu1 %v3027_v48  ;;  %v970_v2 = vld [vmem:[%s3943_s30 + $0x160] sm:$0xff]  ;;  %v4064_v8 = vld [vmem:[%s3943_s30 + $0x168] sm:$0xff] }
 0x17c   : > { %1235 = vmatpush1.bf16.msra.mxu0 %v3025_v47  ;;  %3299 = vmatprep.subr.bf16.mxu1 %v3752_v22  ;;  %v3035_v6 = vcombine.high %v966_v1, %v970_v2  ;;  %v974_v9 = vld [vmem:[%s3943_s30 + $0x180] sm:$0xff]  ;;  %v3056_v10 = vcombine.high %v4061_v7, %v4064_v8  ;;  %v3034_v12 = vcombine.low %v966_v1, %v970_v2  ;;  %v4075_v14 = vld [vmem:[%s3943_s30 + $0x188] sm:$0xff]  ;;  %v4101_v47 = vshrl.u32 %v1077_v42, 7 }
 0x17d   : > { %1236 = vmatprep.subr.bf16.mxu0 %v3029_v52  ;;  %v978_v11 = vld [vmem:[%s3943_s30 + $0x1a0] sm:$0xff]  ;;  %v3036_v13 = vcombine.low %v4061_v7, %v4064_v8  ;;  %v4078_v15 = vld [vmem:[%s3943_s30 + $0x1a8] sm:$0xff] }
 0x17e   : > { %v3038_v18 = vcombine.high %v974_v9, %v978_v11  ;;  %v3057_v19 = vcombine.high %v4075_v14, %v4078_v15  ;;  %v4084_v21 = vld [vmem:[%s3943_s30 + $0x1c8] sm:$0xff]  ;;  %v982_v25 = vld [vmem:[%s3943_s30 + $0x1c0] sm:$0xff]  ;;  %v3037_v29 = vcombine.low %v974_v9, %v978_v11  ;;  %v4104_v48 = vsub.s32 0, %v4101_v47 }
 0x17f   : > { %3300 = vmatpush3.bf16.msra.mxu1 %v3030_v56  ;;  %v4087_v23 = vld [vmem:[%s3943_s30 + $0x1e8] sm:$0xff]  ;;  %v986_v26 = vld [vmem:[%s3943_s30 + $0x1e0] sm:$0xff] }
 0x180   : > { %1237 = vmatpush1.bf16.msra.mxu0 %v3028_v55  ;;  %3301 = vmatprep.subr.bf16.mxu1 %v3752_v22  ;;  %v3058_v27 = vcombine.high %v4084_v21, %v4087_v23  ;;  %v4107_v50 = vld [vmem:[%s3948_s20] sm:$0xff]  ;;  %v4113_v56 = vld [vmem:[%s3948_s20 + $0x8] sm:$0xff] }
 0x181   : > { %1238 = vmatprep.subr.bf16.mxu0 %v3032_v62  ;;  %v1080_v55 = vrot.slane %v4107_v50, %v4104_v48 }
 0x183   : > { %3302 = vmatpush3.bf16.msra.mxu1 %v3033_v4 }
 0x184   : > { %1239 = vmatpush1.bf16.msra.mxu0 %v3031_v63  ;;  %3303 = vmatprep.subr.bf16.mxu1 %v3752_v22  ;;  %v1086_v63 = vrot.slane %v4113_v56, %v4104_v48 }
 0x185   : > { %1240 = vmatprep.subr.bf16.mxu0 %v3035_v6 }
 0x187   : > { %3304 = vmatpush3.bf16.msra.mxu1 %v3036_v13 }
 0x188   : > { %1241 = vmatpush1.bf16.msra.mxu0 %v3034_v12  ;;  %3305 = vmatprep.subr.bf16.mxu1 %v3752_v22 }
 0x189   : > { %1242 = vmatprep.subr.bf16.mxu0 %v3038_v18 }
 0x18c   : > { %1243 = vmatpush1.bf16.msra.mxu0 %v3037_v29 }
 0x201   : > { %v1055_v30 = vpop.xlane.xlu0 %1054 }
 0x202   : > { %v1059_v31 = vmul.f32 0.0078125, %v1055_v30  ;;  %v3039_v30 = vcombine.low %v4075_v14, %v4078_v15 }
 0x204   : > { %v3999_v32 = vsub.f32 %v3976_v16, %v1059_v31  ;;  %v3041_v31 = vcombine.high %v982_v25, %v986_v26  ;;  %3306 = vmatpush3.bf16.msra.mxu1 %v3039_v30 }
 0x205   : > { %v1057_v33 = vpop.xlane.xlu0 %1056  ;;  %3307 = vmatprep.subr.bf16.mxu1 %v3752_v22 }
 0x206   : > { %v1060_v34 = vmul.f32 0.0078125, %v1057_v33  ;;  %v1063_v35 = vmul.f32 %v3999_v32, %v3999_v32  ;;  %v3040_v33 = vcombine.low %v982_v25, %v986_v26  ;;  %1244 = vmatprep.subr.bf16.mxu0 %v3041_v31 }
 0x208   : > { %v4004_v36 = vsub.f32 %v3978_v17, %v1060_v34  ;;  %1065 = vadd.xlane.f32.xlu1 %v1063_v35  ;;  %v3042_v34 = vcombine.low %v4084_v21, %v4087_v23  ;;  %1245 = vmatpush1.bf16.msra.mxu0 %v3040_v33 }
 0x209   : > { %3337 = vmatprep.subr.bf16.mxu0 %v3752_v22 }
 0x20a   : > { %v1064_v37 = vmul.f32 %v4004_v36, %v4004_v36  ;;  %3308 = vmatpush3.bf16.msra.mxu1 %v3042_v34 }
 0x20b   : > { %3313 = vmatprep.subr.bf16.mxu1 %v3752_v22 }
 0x20c   : > { %1067 = vadd.xlane.f32.xlu1 %v1064_v37 }
 0x295   : > { %v1066_v35 = vpop.xlane.xlu1 %1065 }
 0x296   : > { %v1069_v37 = vmul.f32 0.0078125, %v1066_v35 }
 0x298   : > { %v1071_v40 = vadd.f32 1e-06, %v1069_v37 }
 0x299   : > { %v1068_v41 = vpop.xlane.xlu1 %1067 }
 0x29a   : > { %3565 = vrsqrt.f32 %v1071_v40  ;;  %v1070_v43 = vmul.f32 0.0078125, %v1068_v41 }
 0x29c   : > { %v1072_v44 = vadd.f32 1e-06, %v1070_v43 }
 0x29e   : > { %3567 = vrsqrt.f32 %v1072_v44 }
 0x2a4   : > { %v3566_v51 = vpop.eup %3565 }
 0x2a5   : > { %v1075_v52 = vmul.f32 %v3566_v51, %v3999_v32  ;;  %v4123_v32 = vsub.s32 1, %v4101_v47 }
 0x2a7   : > { %v1081_v62 = vmul.f32 %v1080_v55, %v1075_v52  ;;  %v1093_v9 = vrot.slane %v4107_v50, %v4123_v32  ;;  %v1097_v18 = vrot.slane %v4113_v56, %v4123_v32 }
 0x2a8   : > { %v3568_v59 = vpop.eup %3567 }
 0x2a9   : > { %v1076_v60 = vmul.f32 %v3568_v59, %v4004_v36  ;;  %v1087_v2 = vadd.f32 %v1086_v63, %v1081_v62  ;;  %v4126_v36 = vld [vmem:[%s3948_s20 + $0x10] sm:$0xff]  ;;  %v4146_v59 = vld [vmem:[%s4544_s2 + $0x8] sm:$0xff] }
 0x2aa   : > { %v1101_v11 = vrot.slane %v4126_v36, %v4123_v32 }
 0x2ab   : > { %v1082_v1 = vmul.f32 %v1080_v55, %v1076_v60 }
 0x2ad   : > { %v1088_v4 = vadd.f32 %v1086_v63, %v1082_v1  ;;  %v4151_v1 = vld [vmem:[%s4544_s2 + $0x18] sm:$0xff] }
 0x2af   : > { %v1089_v6 = vpack.c.bf16 %v1088_v4, %v1087_v2 }
 0x2b1   : > { %1263 = vmatmul.mubr.bf16.vlgmr.msra.gmra.mrb[0].mxu0 %v1089_v6  ;;  %3310 = vmatmul.mubr.bf16.vlgmr.msra.gmra.mrb[0].mxu1 %v1089_v6 }
 0x2b2   : > { %3315 = vmatprep.mubr.msk.bf16.mxu1 %vm3754_vm0, %v3752_v22  ;;  %3339 = vmatprep.mubr.msk.bf16.mxu0 %vm3754_vm0, %v3752_v22 }
 0x384   : > { %v1264_v12 = vpop.f32.mrb[0].mxu0  ;;  %v1307_v13 = vpop.f32.mrb[0].mxu1 }
 0x385   : > { %v1266_v25 = vpop.f32.mrb[1].mxu0  ;;  %v3311_v26 = vpop.f32.mrb[1].mxu1  ;;  %v1265_v31 = vadd.f32 %v1264_v12, %v1093_v9  ;;  %v1308_v33 = vadd.f32 %v1307_v13, %v1101_v11 }
 0x386   : > { %v1268_v29 = vpop.f32.mrb[2].mxu0  ;;  %v1310_v30 = vpop.f32.mrb[2].mxu1  ;;  %v1267_v41 = vadd.f32 %v1266_v25, %v1097_v18 }
 0x387   : > { %v1269_v34 = vadd.f32 %v1268_v29, %v1093_v9  ;;  %v1311_v35 = vadd.f32 %v1310_v30, %v1101_v11  ;;  %v1270_v37 = vpop.f32.mrb[3].mxu0  ;;  %v3312_v40 = vpop.f32.mrb[3].mxu1 }
 0x388   : > { %v1271_v42 = vadd.f32 %v1270_v37, %v1097_v18 }
 0x389   : > { %v1314_v43 = vpack.c.bf16 %v1269_v34, %v1265_v31  ;;  %v4134_v44 = vpack.c.bf16 %v1311_v35, %v1308_v33 }
 0x38a   : > { %v1315_v51 = vpack.c.bf16 %v1271_v42, %v1267_v41 }
 0x38c   : > { %v1322_v52 = vsel %vm1317_vm1, %v1315_v51, 0 }
 0x38d   : > { %3314 = vmatpush3.bf16.xpose.msra.mxu1 %v1322_v52 }
 0x38e   : > { %3319 = vmatprep.subr.bf16.mxu1 %v3752_v22 }
 0x394   : > { %3316 = vmatmul.mubr.msk.bf16.vlgmr.msra.gmra.mrb[4].mxu1 %vm1317_vm1, %v1314_v43 }
 0x395   : > { %3320 = vmatpush3.bf16.msra.mxu1 %v4134_v44  ;;  %3321 = vmatprep.mubr.msk.bf16.mxu1 %vm3754_vm0, %v3752_v22 }
 0x396   : > { %3325 = vmatprep.subr.bf16.mxu1 %v3752_v22 }
 0x467   : > { %v1358_v55 = vpop.f32.mrb[4].mxu1 }
 0x468   : > { %v1365_v60 = vmul.f32 0.17677669, %v1358_v55  ;;  %v3317_v62 = vpop.f32.mrb[5].mxu1 }
 0x469   : > { %v1361_v63 = vpop.f32.mrb[6].mxu1 }
 0x46a   : > { %v1366_v2 = vmul.f32 0.17677669, %v1361_v63  ;;  %v3318_v4 = vpop.f32.mrb[7].mxu1  ;;  %v1367_v6 = vadd.f32 %v1365_v60, %v4146_v59 }
 0x46c   : > { %v1370_v9 = vsel %vm1369_vm2, %v1367_v6, -inf  ;;  %v1368_v11 = vadd.f32 %v1366_v2, %v4151_v1 }
 0x46d   : > { %1371 = vmax.xlane.f32.xlu0 %v1370_v9 }
 0x46e   : > { %v1373_v12 = vsel %vm1369_vm2, %v1368_v11, -inf }
 0x46f   : > { %1374 = vmax.xlane.f32.xlu1 %v1373_v12 }
 0x4fa   : > { %v1372_v13 = vpop.xlane.xlu0 %1371 }
 0x4fb   : > { %v1376_v18 = vsub.f32 %v1367_v6, %v1372_v13 }
 0x4fc   : > { %v1375_v25 = vpop.xlane.xlu1 %1374 }
 0x4fd   : > { %v1378_v26 = vmul.f32 1.442695, %v1376_v18  ;;  %v1377_v29 = vsub.f32 %v1368_v11, %v1375_v25 }
 0x4ff   : > { %3569 = vpow2.f32 %v1378_v26  ;;  %v1380_v30 = vmul.f32 1.442695, %v1377_v29 }
 0x501   : > { %3571 = vpow2.f32 %v1380_v30 }
 0x509   : > { %v3570_v31 = vpop.eup %3569 }
 0x50a   : > { %v1382_v33 = vsel %vm1369_vm2, %v3570_v31, 0.0 }
 0x50b   : > { %v3572_v34 = vpop.eup %3571  ;;  %1383 = vadd.xlane.f32.xlu0 %v1382_v33 }
 0x50c   : > { %v1385_v35 = vsel %vm1369_vm2, %v3572_v34, 0.0 }
 0x50d   : > { %1386 = vadd.xlane.f32.xlu1 %v1385_v35 }
 0x51e   : > { %1438 = vrot.lane.b32.xlu1 %v1314_v43, %s3755_s18 }
 0x521   : > { %1441 = vrot.lane.b32.xlu0 %v1315_v51, %s3755_s18 }
 0x522   : > { %1567 = vrot.lane.b32.xlu1 %v1315_v51, %s3756_s11 }
 0x525   : > { %1692 = vrot.lane.b32.xlu0 %v1315_v51, %s3757_s26 }
 0x526   : > { %1565 = vrot.lane.b32.xlu1 %v1314_v43, %s3756_s11 }
 0x52a   : > { %1690 = vrot.lane.b32.xlu1 %v1314_v43, %s3757_s26 }
 0x598   : > { %v1384_v37 = vpop.xlane.xlu0 %1383 }
 0x599   : > { %3573 = vrcp.f32 %v1384_v37 }
 0x59a   : > { %v1387_v40 = vpop.xlane.xlu1 %1386 }
 0x59b   : > { %3575 = vrcp.f32 %v1387_v40 }
 0x59c   : > { %v1442_v42 = vpop.permute.xlu0 %1441 }
 0x59d   : > { %v1447_v43 = vsel %vm1317_vm1, %v1442_v42, 0 }
 0x59e   : > { %v1439_v41 = vpop.permute.xlu1 %1438 }
 0x5a0   : > { %v1693_v2 = vpop.permute.xlu0 %1692 }
 0x5a1   : > { %v1698_v9 = vsel %vm1317_vm1, %v1693_v2, 0 }
 0x5a2   : > { %v1568_v52 = vpop.permute.xlu1 %1567 }
 0x5a3   : > { %v3574_v55 = vpop.eup %3573  ;;  %v1573_v60 = vsel %vm1317_vm1, %v1568_v52, 0 }
 0x5a4   : > { %3338 = vmatpush3.bf16.xpose.msra.mxu0 %v1573_v60  ;;  %v1390_v63 = vmul.f32 %v3574_v55, %v3570_v31 }
 0x5a5   : > { %v3576_v62 = vpop.eup %3575  ;;  %3349 = vmatprep.subr.bf16.mxu0 %v3752_v22 }
 0x5a6   : > { %v1391_v51 = vmul.f32 %v3576_v62, %v3572_v34  ;;  %v1566_v6 = vpop.permute.xlu1 %1565 }
 0x5a8   : > { %v1392_v4 = vpack.c.bf16 %v1391_v51, %v1390_v63 }
 0x5aa   : > { %3322 = vmatmul.mubr.msk.bf16.vlgmr.msra.gmra.mrb[8].mxu1 %vm1369_vm2, %v1392_v4  ;;  %v1691_v11 = vpop.permute.xlu1 %1690 }
 0x5ab   : > { %3326 = vmatpush3.bf16.xpose.msra.mxu1 %v1447_v43  ;;  %3340 = vmatmul.mubr.msk.bf16.vlgmr.msra.gmra.mrb[4].mxu0 %vm1317_vm1, %v1566_v6 }
 0x5ac   : > { %3350 = vmatpush3.bf16.xpose.msra.mxu0 %v1698_v9  ;;  %3327 = vmatprep.mubr.msk.bf16.mxu1 %vm3754_vm0, %v3752_v22 }
 0x5ad   : > { %3351 = vmatprep.mubr.msk.bf16.mxu0 %vm3754_vm0, %v3752_v22  ;;  %3331 = vmatprep.subr.bf16.mxu1 %v3752_v22 }
 0x5ae   : > { %3361 = vmatprep.subr.bf16.mxu0 %v3752_v22 }
 0x5b2   : > { %3328 = vmatmul.mubr.msk.bf16.vlgmr.msra.gmra.mrb[12].mxu1 %vm1317_vm1, %v1439_v41 }
 0x5b3   : > { %3352 = vmatmul.mubr.msk.bf16.vlgmr.msra.gmra.mrb[8].mxu0 %vm1317_vm1, %v1691_v11  ;;  %3333 = vmatprep.mubr.msk.bf16.mxu1 %vm3754_vm0, %v3752_v22 }
 0x5b4   : > { %3362 = vmatpush3.bf16.msra.mxu0 %v3051_v28  ;;  %3377 = vmatprep.mubr.msk.bf16.mxu0 %vm3754_vm0, %v3752_v22 }
 0x5b5   : > { %3363 = vmatprep.subr.bf16.mxu0 %v3752_v22 }
 0x5b8   : > { %3364 = vmatpush3.bf16.msra.mxu0 %v3052_v49 }
 0x5b9   : > { %3365 = vmatprep.subr.bf16.mxu0 %v3752_v22 }
 0x5bc   : > { %3366 = vmatpush3.bf16.msra.mxu0 %v3053_v57 }
 0x5bd   : > { %3367 = vmatprep.subr.bf16.mxu0 %v3752_v22 }
 0x5c0   : > { %3368 = vmatpush3.bf16.msra.mxu0 %v3054_v58 }
 0x5c1   : > { %3369 = vmatprep.subr.bf16.mxu0 %v3752_v22 }
 0x5c4   : > { %3370 = vmatpush3.bf16.msra.mxu0 %v3055_v5 }
 0x5c5   : > { %3371 = vmatprep.subr.bf16.mxu0 %v3752_v22 }
 0x5c8   : > { %3372 = vmatpush3.bf16.msra.mxu0 %v3056_v10 }
 0x5c9   : > { %3373 = vmatprep.subr.bf16.mxu0 %v3752_v22 }
 0x5cc   : > { %3374 = vmatpush3.bf16.msra.mxu0 %v3057_v19 }
 0x5cd   : > { %3375 = vmatprep.subr.bf16.mxu0 %v3752_v22 }
 0x5d0   : > { %3376 = vmatpush3.bf16.msra.mxu0 %v3058_v27 }
 0x67d   : > { %v4214_v20 = vpop.f32.mrb[8].mxu1 }
 0x67e   : > { %v3323_v24 = vpop.f32.mrb[9].mxu1  ;;  %v1609_v28 = vpop.f32.mrb[4].mxu0 }
 0x67f   : > { %v4216_v38 = vpop.f32.mrb[10].mxu1  ;;  %v3341_v39 = vpop.f32.mrb[5].mxu0  ;;  %v1616_v54 = vmul.f32 0.17677669, %v1609_v28 }
 0x680   : > { %v3324_v45 = vpop.f32.mrb[11].mxu1  ;;  %v1612_v46 = vpop.f32.mrb[6].mxu0 }
 0x681   : > { %v3342_v49 = vpop.f32.mrb[7].mxu0  ;;  %v1617_v21 = vmul.f32 0.17677669, %v1612_v46  ;;  %v1618_v12 = vadd.f32 %v1616_v54, %v4146_v59 }
 0x683   : > { %v1620_v26 = vsel %vm1369_vm2, %v1618_v12, -inf  ;;  %v1619_v29 = vadd.f32 %v1617_v21, %v4151_v1 }
 0x685   : > { %v1483_v53 = vpop.f32.mrb[12].mxu1  ;;  %v1623_v31 = vsel %vm1369_vm2, %v1619_v29, -inf }
 0x686   : > { %v1490_v57 = vmul.f32 0.17677669, %v1483_v53  ;;  %v3329_v58 = vpop.f32.mrb[13].mxu1  ;;  %v1734_v61 = vpop.f32.mrb[8].mxu0 }
 0x687   : > { %v1486_v0 = vpop.f32.mrb[14].mxu1  ;;  %v3353_v5 = vpop.f32.mrb[9].mxu0  ;;  %v1741_v25 = vmul.f32 0.17677669, %v1734_v61 }
 0x688   : > { %v1491_v7 = vmul.f32 0.17677669, %v1486_v0  ;;  %v3330_v8 = vpop.f32.mrb[15].mxu1  ;;  %v1737_v10 = vpop.f32.mrb[10].mxu0  ;;  %v1492_v14 = vadd.f32 %v1490_v57, %v4146_v59 }
 0x689   : > { %v1742_v15 = vmul.f32 0.17677669, %v1737_v10  ;;  %v3354_v19 = vpop.f32.mrb[11].mxu0  ;;  %v1743_v33 = vadd.f32 %v1741_v25, %v4146_v59 }
 0x68a   : > { %v1494_v23 = vsel %vm1369_vm2, %v1492_v14, -inf  ;;  %v1493_v27 = vadd.f32 %v1491_v7, %v4151_v1 }
 0x68b   : > { %1495 = vmax.xlane.f32.xlu0 %v1494_v23  ;;  %v1744_v18 = vadd.f32 %v1742_v15, %v4151_v1  ;;  %v1745_v34 = vsel %vm1369_vm2, %v1743_v33, -inf }
 0x68c   : > { %v1497_v13 = vsel %vm1369_vm2, %v1493_v27, -inf }
 0x68d   : > { %1498 = vmax.xlane.f32.xlu1 %v1497_v13  ;;  %v1748_v30 = vsel %vm1369_vm2, %v1744_v18, -inf }
 0x68f   : > { %1621 = vmax.xlane.f32.xlu0 %v1620_v26 }
 0x691   : > { %1749 = vmax.xlane.f32.xlu1 %v1748_v30 }
 0x693   : > { %1624 = vmax.xlane.f32.xlu0 %v1623_v31 }
 0x697   : > { %1746 = vmax.xlane.f32.xlu0 %v1745_v34 }
 0x718   : > { %v1496_v35 = vpop.xlane.xlu0 %1495 }
 0x719   : > { %v1500_v62 = vsub.f32 %v1492_v14, %v1496_v35 }
 0x71a   : > { %v1499_v37 = vpop.xlane.xlu1 %1498 }
 0x71b   : > { %v1501_v63 = vsub.f32 %v1493_v27, %v1499_v37  ;;  %v1502_v43 = vmul.f32 1.442695, %v1500_v62 }
 0x71c   : > { %v1622_v40 = vpop.xlane.xlu0 %1621 }
 0x71d   : > { %v1626_v41 = vsub.f32 %v1618_v12, %v1622_v40  ;;  %v1504_v6 = vmul.f32 1.442695, %v1501_v63 }
 0x71e   : > { %v1750_v42 = vpop.xlane.xlu1 %1749 }
 0x71f   : > { %v1628_v52 = vmul.f32 1.442695, %v1626_v41  ;;  %v1752_v55 = vsub.f32 %v1744_v18, %v1750_v42 }
 0x720   : > { %v1625_v1 = vpop.xlane.xlu0 %1624 }
 0x721   : > { %3577 = vpow2.f32 %v1628_v52  ;;  %v1627_v60 = vsub.f32 %v1619_v29, %v1625_v1  ;;  %v1755_v51 = vmul.f32 1.442695, %v1752_v55 }
 0x723   : > { %v1630_v2 = vmul.f32 1.442695, %v1627_v60 }
 0x724   : > { %v1747_v4 = vpop.xlane.xlu0 %1746 }
 0x725   : > { %3579 = vpow2.f32 %v1630_v2  ;;  %v1751_v59 = vsub.f32 %v1743_v33, %v1747_v4 }
 0x726   : > { %3581 = vpow2.f32 %v1755_v51 }
 0x727   : > { %v1753_v9 = vmul.f32 1.442695, %v1751_v59 }
 0x729   : > { %3583 = vpow2.f32 %v1753_v9 }
 0x72a   : > { %3585 = vpow2.f32 %v1502_v43 }
 0x72b   : > { %v3578_v11 = vpop.eup %3577  ;;  %3587 = vpow2.f32 %v1504_v6 }
 0x72c   : > { %v1632_v24 = vsel %vm1369_vm2, %v3578_v11, 0.0 }
 0x72d   : > { %1633 = vadd.xlane.f32.xlu0 %v1632_v24 }
 0x72f   : > { %v3580_v28 = vpop.eup %3579 }
 0x730   : > { %v1635_v39 = vsel %vm1369_vm2, %v3580_v28, 0.0  ;;  %v3582_v45 = vpop.eup %3581 }
 0x731   : > { %1636 = vadd.xlane.f32.xlu1 %v1635_v39  ;;  %v1760_v53 = vsel %vm1369_vm2, %v3582_v45, 0.0 }
 0x733   : > { %v3584_v46 = vpop.eup %3583 }
 0x734   : > { %v3586_v49 = vpop.eup %3585  ;;  %v1757_v54 = vsel %vm1369_vm2, %v3584_v46, 0.0 }
 0x735   : > { %v3588_v57 = vpop.eup %3587  ;;  %1761 = vadd.xlane.f32.xlu1 %v1760_v53  ;;  %1758 = vadd.xlane.f32.xlu0 %v1757_v54  ;;  %v1506_v61 = vsel %vm1369_vm2, %v3586_v49, 0.0 }
 0x736   : > { %v1509_v58 = vsel %vm1369_vm2, %v3588_v57, 0.0 }
 0x739   : > { %1510 = vadd.xlane.f32.xlu1 %v1509_v58  ;;  %1507 = vadd.xlane.f32.xlu0 %v1506_v61 }
 0x74a   : > { %1643 = vrot.lane.b32.xlu1 %v4134_v44, %s3756_s11 }
 0x74e   : > { %1768 = vrot.lane.b32.xlu1 %v4134_v44, %s3757_s26 }
 0x74f   : > { %1518 = vrot.lane.b32.xlu0 %v4134_v44, %s3755_s18 }
 0x7ba   : > { %v1634_v0 = vpop.xlane.xlu0 %1633 }
 0x7be   : > { %v1637_v5 = vpop.xlane.xlu1 %1636 }
 0x7c2   : > { %v1762_v7 = vpop.xlane.xlu1 %1761  ;;  %v1759_v8 = vpop.xlane.xlu0 %1758 }
 0x7c6   : > { %v1511_v10 = vpop.xlane.xlu1 %1510  ;;  %v1508_v14 = vpop.xlane.xlu0 %1507 }
 0x7c7   : > { %3589 = vrcp.f32 %v1511_v10 }
 0x7c8   : > { %3591 = vrcp.f32 %v1508_v14 }
 0x7c9   : > { %3593 = vrcp.f32 %v1637_v5 }
 0x7ca   : > { %v1519_v15 = vpop.permute.xlu0 %1518  ;;  %3595 = vrcp.f32 %v1634_v0  ;;  %v1644_v13 = vpop.permute.xlu1 %1643 }
 0x7cb   : > { %3332 = vmatpush3.bf16.msra.mxu1 %v1519_v15  ;;  %3597 = vrcp.f32 %v1762_v7  ;;  %v4261_v7 = vld [vmem:[%s3948_s20 + $0x18] sm:$0xff] }
 0x7cc   : > { %3343 = vmatprep.subr.bf16.mxu1 %v3752_v22  ;;  %3599 = vrcp.f32 %v1759_v8 }
 0x7ce   : > { %v1769_v33 = vpop.permute.xlu1 %1768 }
 0x7d1   : > { %v3590_v19 = vpop.eup %3589 }
 0x7d2   : > { %v3592_v21 = vpop.eup %3591  ;;  %v1515_v23 = vmul.f32 %v3590_v19, %v3588_v57 }
 0x7d3   : > { %v1514_v27 = vmul.f32 %v3592_v21, %v3586_v49  ;;  %v3594_v12 = vpop.eup %3593 }
 0x7d4   : > { %v3596_v18 = vpop.eup %3595  ;;  %v1641_v25 = vmul.f32 %v3594_v12, %v3580_v28  ;;  %v933_v12 = vld [vmem:[%s3943_s30 + $0x38] sm:$0xff] }
 0x7d5   : > { %v1516_v44 = vpack.c.bf16 %v1515_v23, %v1514_v27  ;;  %v1640_v26 = vmul.f32 %v3596_v18, %v3578_v11  ;;  %v3598_v29 = vpop.eup %3597  ;;  %v932_v23 = vld [vmem:[%s3943_s30 + $0x30] sm:$0xff]  ;;  %v929_v27 = vld [vmem:[%s3943_s30 + $0x18] sm:$0xff] }
 0x7d6   : > { %v3600_v31 = vpop.eup %3599  ;;  %v1766_v34 = vmul.f32 %v3598_v29, %v3582_v45  ;;  %v940_v18 = vld [vmem:[%s3943_s30 + $0x70] sm:$0xff]  ;;  %v937_v29 = vld [vmem:[%s3943_s30 + $0x58] sm:$0xff] }
 0x7d7   : > { %3334 = vmatmul.mubr.msk.bf16.vlgmr.msra.gmra.mrb[16].mxu1 %vm1369_vm2, %v1516_v44  ;;  %v1642_v30 = vpack.c.bf16 %v1641_v25, %v1640_v26  ;;  %v1765_v35 = vmul.f32 %v3600_v31, %v3584_v46  ;;  %v3061_v25 = vcombine.low %v929_v27, %v933_v12  ;;  %v3062_v26 = vcombine.high %v929_v27, %v933_v12  ;;  %v977_v27 = vld [vmem:[%s3943_s30 + $0x198] sm:$0xff] }
 0x7d8   : > { %3344 = vmatpush3.bf16.msra.mxu1 %v1644_v13  ;;  %3345 = vmatprep.mubr.msk.bf16.mxu1 %vm3754_vm0, %v3752_v22  ;;  %v936_v13 = vld [vmem:[%s3943_s30 + $0x50] sm:$0xff] }
 0x7d9   : > { %3355 = vmatprep.subr.bf16.mxu1 %v3752_v22  ;;  %v1767_v37 = vpack.c.bf16 %v1766_v34, %v1765_v35  ;;  %2183 = vmatprep.subr.bf16.mxu0 %v3062_v26  ;;  %v988_v26 = vld [vmem:[%s3943_s30 + $0x1f0] sm:$0xff] }
 0x7df   : > { %3346 = vmatmul.mubr.msk.bf16.vlgmr.msra.gmra.mrb[20].mxu1 %vm1369_vm2, %v1642_v30  ;;  %v941_v30 = vld [vmem:[%s3943_s30 + $0x78] sm:$0xff] }
 0x7e0   : > { %3356 = vmatpush3.bf16.msra.mxu1 %v1769_v33  ;;  %3357 = vmatprep.mubr.msk.bf16.mxu1 %vm3754_vm0, %v3752_v22  ;;  %v3066_v31 = vcombine.high %v937_v29, %v941_v30  ;;  %v3063_v33 = vcombine.low %v936_v13, %v940_v18  ;;  %v3065_v34 = vcombine.low %v937_v29, %v941_v30  ;;  %v989_v30 = vld [vmem:[%s3943_s30 + $0x1f8] sm:$0xff] }
 0x7e7   : > { %3358 = vmatmul.mubr.msk.bf16.vlgmr.msra.gmra.mrb[24].mxu1 %vm1369_vm2, %v1767_v37 }
 0x7e8   : > { %2172 = vmatprep.mubr.bf16.mxu1 %v3753_v3 }
 0x8aa   : > { %v1558_v40 = vpop.f32.mrb[16].mxu1 }
 0x8ab   : > { %v3335_v41 = vpop.f32.mrb[17].mxu1 }
 0x8ac   : > { %v1561_v42 = vpop.f32.mrb[18].mxu1 }
 0x8ad   : > { %v3518_v52 = vpack.i.bf16 %v1561_v42, %v1558_v40  ;;  %v3336_v55 = vpop.f32.mrb[19].mxu1 }
 0x8af   : > { %3519 = vrot.lane.b32.xlu1 %v3518_v52, %s3757_s26 }
 0x8b2   : > { %v1683_v1 = vpop.f32.mrb[20].mxu1 }
 0x8b3   : > { %v3347_v60 = vpop.f32.mrb[21].mxu1 }
 0x8b4   : > { %v1686_v62 = vpop.f32.mrb[22].mxu1  ;;  %v944_v60 = vld [vmem:[%s3943_s30 + $0x90] sm:$0xff] }
 0x8b5   : > { %v3523_v63 = vpack.i.bf16 %v1686_v62, %v1683_v1  ;;  %v3348_v51 = vpop.f32.mrb[23].mxu1  ;;  %v948_v62 = vld [vmem:[%s3943_s30 + $0xb0] sm:$0xff] }
 0x8b6   : > { %v3068_v51 = vcombine.high %v944_v60, %v948_v62 }
 0x8b7   : > { %3524 = vrot.lane.b32.xlu0 %v3523_v63, %s3756_s11  ;;  %v945_v63 = vld [vmem:[%s3943_s30 + $0x98] sm:$0xff] }
 0x8ba   : > { %v1808_v22 = vpop.f32.mrb[24].mxu1 }
 0x8bb   : > { %v3359_v2 = vpop.f32.mrb[25].mxu1 }
 0x8bc   : > { %v1811_v4 = vpop.f32.mrb[26].mxu1  ;;  %v3067_v2 = vcombine.low %v944_v60, %v948_v62  ;;  %v1954_v62 = vrot.slane %v4126_v36, %v4104_v48 }
 0x8bd   : > { %v3528_v59 = vpack.i.bf16 %v1811_v4, %v1808_v22  ;;  %v3360_v43 = vpop.f32.mrb[27].mxu1  ;;  %v949_v22 = vld [vmem:[%s3943_s30 + $0xb8] sm:$0xff] }
 0x8be   : > { %v3069_v4 = vcombine.low %v945_v63, %v949_v22  ;;  %v952_v43 = vld [vmem:[%s3943_s30 + $0xd0] sm:$0xff] }
 0x8bf   : > { %3529 = vrot.lane.b32.xlu1 %v3528_v59, %s3755_s18  ;;  %v3070_v59 = vcombine.high %v945_v63, %v949_v22  ;;  %v1960_v22 = vrot.slane %v4261_v7, %v4104_v48  ;;  %v3536_v48 = vld [vmem:[%s3932_s21 + $0x80] sm:$0xff]  }
 0x921   : > { %v3520_v6 = vpop.permute.xlu1 %3519 }
 0x922   : > { %v3522_v11 = vunpack.i.h.bf16 %v3520_v6  ;;  %v3521_v24 = vunpack.i.l.bf16 %v3520_v6  ;;  %v956_v6 = vld [vmem:[%s3943_s30 + $0xf0] sm:$0xff] }
 0x924   : > { %v1840_v46 = vsel %vm1317_vm1, %v4216_v38, %v3522_v11  ;;  %v1839_v49 = vsel %vm1317_vm1, %v4214_v20, %v3521_v24  ;;  %v1926_v38 = vrot.slane %v4261_v7, %v4123_v32  ;;  %v928_v32 = vld [vmem:[%s3943_s30 + $0x10] sm:$0xff]  ;;  %v3072_v11 = vcombine.high %v952_v43, %v956_v6  ;;  %v957_v24 = vld [vmem:[%s3943_s30 + $0xf8] sm:$0xff] }
 0x925   : > { %v3060_v44 = vcombine.high %v928_v32, %v932_v23 }
 0x927   : > { %2140 = vmatprep.subr.bf16.mxu1 %v3060_v44  ;;  %v981_v44 = vld [vmem:[%s3943_s30 + $0x1b8] sm:$0xff] }
 0x929   : > { %v3525_v9 = vpop.permute.xlu0 %3524 }
 0x92a   : > { %v3527_v28 = vunpack.i.h.bf16 %v3525_v9  ;;  %v3526_v39 = vunpack.i.l.bf16 %v3525_v9  ;;  %v953_v9 = vld [vmem:[%s3943_s30 + $0xd8] sm:$0xff] }
 0x92c   : > { %v1843_v57 = vsel %vm1841_vm3, %v1840_v46, %v3527_v28  ;;  %v1842_v58 = vsel %vm1841_vm3, %v1839_v49, %v3526_v39  ;;  %v3071_v28 = vcombine.low %v952_v43, %v956_v6  ;;  %v3073_v39 = vcombine.low %v953_v9, %v957_v24  ;;  %v960_v46 = vld [vmem:[%s3943_s30 + $0x110] sm:$0xff] }
 0x92d   : > { %v964_v49 = vld [vmem:[%s3943_s30 + $0x130] sm:$0xff] }
 0x931   : > { %v3530_v45 = vpop.permute.xlu1 %3529 }
 0x932   : > { %v3532_v53 = vunpack.i.h.bf16 %v3530_v45  ;;  %v3531_v54 = vunpack.i.l.bf16 %v3530_v45  ;;  %v3074_v45 = vcombine.high %v953_v9, %v957_v24  ;;  %v3535_v24 = vld [vmem:[%s3932_s21] sm:$0xff]  }
 0x934   : > { %v1846_v61 = vsel %vm1844_vm4, %v1843_v57, %v3532_v53  ;;  %v1845_v0 = vsel %vm1844_vm4, %v1842_v58, %v3531_v54  ;;  %v961_v53 = vld [vmem:[%s3943_s30 + $0x118] sm:$0xff]  ;;  %v3076_v54 = vcombine.high %v960_v46, %v964_v49  ;;  %v3075_v58 = vcombine.low %v960_v46, %v964_v49  ;;  %v3541_v46 = vld [vmem:[%s3932_s21 + $0x50] sm:$0xff]  }
 0x935   : > { %v1847_v5 = vpack.c.bf16 %v1846_v61, %v1845_v0  ;;  %v965_v57 = vld [vmem:[%s3943_s30 + $0x138] sm:$0xff]  ;;  %v3542_v49 = vld [vmem:[%s3932_s21 + $0xd0] sm:$0xff]  }
 0x936   : > { %v3077_v61 = vcombine.low %v961_v53, %v965_v57  ;;  %v3078_v0 = vcombine.high %v961_v53, %v965_v57  ;;  %v3543_v53 = vld [vmem:[%s3932_s21 + $0x10] sm:$0xff]   ;;  %v3545_v57 = vld [vmem:[%s3932_s21 + $0x58] sm:$0xff]  }
 0x937   : > { %3378 = vmatmul.mubr.bf16.vlgmr.msra.gmra.mrb[12].mxu0 %v1847_v5  ;;  %v968_v5 = vld [vmem:[%s3943_s30 + $0x150] sm:$0xff] }
 0x938   : > { %2215 = vmatprep.mubr.bf16.mxu0 %v3753_v3  ;;  %2184 = vmatpush1.bf16.msra.mxu0 %v3061_v25  ;;  %v984_v25 = vld [vmem:[%s3943_s30 + $0x1d0] sm:$0xff] }
 0x939   : > { %2185 = vmatprep.subr.bf16.mxu0 %v3066_v31  ;;  %v3088_v29 = vcombine.high %v984_v25, %v988_v26  ;;  %v3087_v31 = vcombine.low %v984_v25, %v988_v26  ;;  %v1966_v25 = vsub.s32 2, %v4101_v47 }
 0x93b   : > { %v1967_v26 = vrot.slane %v4107_v50, %v1966_v25 }
 0x93c   : > { %2186 = vmatpush1.bf16.msra.mxu0 %v3065_v34 }
 0x93d   : > { %2187 = vmatprep.subr.bf16.mxu0 %v3070_v59 }
 0x940   : > { %2188 = vmatpush1.bf16.msra.mxu0 %v3069_v4 }
 0x941   : > { %2189 = vmatprep.subr.bf16.mxu0 %v3074_v45  ;;  %v3540_v45 = vld [vmem:[%s3932_s21 + $0x88] sm:$0xff]  }
 0x944   : > { %2190 = vmatpush1.bf16.msra.mxu0 %v3073_v39  ;;  %v3539_v39 = vld [vmem:[%s3932_s21 + $0x8] sm:$0xff]  }
 0x945   : > { %2191 = vmatprep.subr.bf16.mxu0 %v3078_v0  ;;  %v3548_v0 = vld [vmem:[%s3932_s21 + $0x98] sm:$0xff]  }
 0x948   : > { %2192 = vmatpush1.bf16.msra.mxu0 %v3077_v61  ;;  %v3547_v61 = vld [vmem:[%s3932_s21 + $0x18] sm:$0xff]  }
 0xa0a   : > { %v1914_v20 = vpop.f32.mrb[12].mxu0 }
 0xa0b   : > { %v1921_v8 = vadd.f32 %v1914_v20, %v3976_v16  ;;  %v3379_v10 = vpop.f32.mrb[13].mxu0  ;;  %v3059_v16 = vcombine.low %v928_v32, %v932_v23  ;;  %v969_v20 = vld [vmem:[%s3943_s30 + $0x158] sm:$0xff]  ;;  %v976_v32 = vld [vmem:[%s3943_s30 + $0x190] sm:$0xff] }
 0xa0c   : > { %v1917_v14 = vpop.f32.mrb[14].mxu0  ;;  %v973_v10 = vld [vmem:[%s3943_s30 + $0x178] sm:$0xff]  ;;  %v980_v23 = vld [vmem:[%s3943_s30 + $0x1b0] sm:$0xff] }
 0xa0d   : > { %v4266_v15 = vadd.f32 %v1926_v38, %v1921_v8  ;;  %v1922_v19 = vadd.f32 %v1917_v14, %v3978_v17  ;;  %v3380_v21 = vpop.f32.mrb[15].mxu0  ;;  %v3064_v17 = vcombine.high %v936_v13, %v940_v18  ;;  %2141 = vmatpush1.bf16.msra.mxu1 %v3059_v16  ;;  %v3084_v16 = vcombine.high %v976_v32, %v980_v23 }
 0xa0e   : > { %v3082_v21 = vcombine.high %v969_v20, %v973_v10  ;;  %v3083_v12 = vcombine.low %v976_v32, %v980_v23  ;;  %v3085_v13 = vcombine.low %v977_v27, %v981_v44  ;;  %v3086_v18 = vcombine.high %v977_v27, %v981_v44  ;;  %v3557_v32 = vld [vmem:[%s3932_s21 + $0x70] sm:$0xff]   ;;  %v3561_v44 = vld [vmem:[%s3932_s21 + $0x78] sm:$0xff]  }
 0xa0f   : > { %v4269_v3 = vadd.f32 %v1926_v38, %v1922_v19  ;;  %1929 = vadd.xlane.f32.xlu0 %v4266_v15  ;;  %2142 = vmatprep.subr.bf16.mxu1 %v3064_v17  ;;  %v972_v38 = vld [vmem:[%s3943_s30 + $0x170] sm:$0xff]  ;;  %v3081_v19 = vcombine.low %v969_v20, %v973_v10  ;;  %v985_v17 = vld [vmem:[%s3943_s30 + $0x1d8] sm:$0xff]  ;;  %v3558_v23 = vld [vmem:[%s3932_s21 + $0xf0] sm:$0xff]  }
 0xa10   : > { %v3080_v8 = vcombine.high %v968_v5, %v972_v38  ;;  %v3079_v14 = vcombine.low %v968_v5, %v972_v38  ;;  %2193 = vmatprep.subr.bf16.mxu0 %v3082_v21  ;;  %v3089_v34 = vcombine.low %v985_v17, %v989_v30  ;;  %v3549_v5 = vld [vmem:[%s3932_s21 + $0x60] sm:$0xff]   ;;  %v3553_v10 = vld [vmem:[%s3932_s21 + $0x68] sm:$0xff]   ;;  %v3559_v27 = vld [vmem:[%s3932_s21 + $0x30] sm:$0xff]  }
 0xa11   : > { %1931 = vadd.xlane.f32.xlu1 %v4269_v3  ;;  %2143 = vmatpush1.bf16.msra.mxu1 %v3063_v33  ;;  %v3090_v33 = vcombine.high %v985_v17, %v989_v30  ;;  %v3550_v38 = vld [vmem:[%s3932_s21 + $0xe0] sm:$0xff]   ;;  %v3556_v21 = vld [vmem:[%s3932_s21 + $0xa8] sm:$0xff]   ;;  %v1975_v17 = vrot.slane %v4126_v36, %v1966_v25  ;;  %v1979_v30 = vrot.slane %v4261_v7, %v1966_v25 }
 0xa12   : > { %2144 = vmatprep.subr.bf16.mxu1 %v3068_v51  ;;  %2194 = vmatpush1.bf16.msra.mxu0 %v3081_v19  ;;  %v3551_v20 = vld [vmem:[%s3932_s21 + $0x20] sm:$0xff]   ;;  %v3555_v19 = vld [vmem:[%s3932_s21 + $0x28] sm:$0xff]  }
 0xa13   : > { %2195 = vmatprep.subr.bf16.mxu0 %v3086_v18  ;;  %v3564_v18 = vld [vmem:[%s3932_s21 + $0xb8] sm:$0xff]  }
 0xa15   : > { %2145 = vmatpush1.bf16.msra.mxu1 %v3067_v2 }
 0xa16   : > { %2146 = vmatprep.subr.bf16.mxu1 %v3072_v11  ;;  %2196 = vmatpush1.bf16.msra.mxu0 %v3085_v13  ;;  %v3533_v11 = vld [vmem:[%s3932_s21 + $0x40] sm:$0xff]   ;;  %v3563_v13 = vld [vmem:[%s3932_s21 + $0x38] sm:$0xff]  }
 0xa17   : > { %2197 = vmatprep.subr.bf16.mxu0 %v3090_v33 }
 0xa19   : > { %2147 = vmatpush1.bf16.msra.mxu1 %v3071_v28  ;;  %v3538_v28 = vld [vmem:[%s3932_s21 + $0xc8] sm:$0xff]  }
 0xa1a   : > { %2148 = vmatprep.subr.bf16.mxu1 %v3076_v54  ;;  %2198 = vmatpush1.bf16.msra.mxu0 %v3089_v34  ;;  %v3544_v54 = vld [vmem:[%s3932_s21 + $0x90] sm:$0xff]  }
 0xa1d   : > { %2149 = vmatpush1.bf16.msra.mxu1 %v3075_v58  ;;  %v3546_v58 = vld [vmem:[%s3932_s21 + $0xd8] sm:$0xff]  }
 0xa1e   : > { %2150 = vmatprep.subr.bf16.mxu1 %v3080_v8  ;;  %v3552_v8 = vld [vmem:[%s3932_s21 + $0xa0] sm:$0xff]  }
 0xa21   : > { %2151 = vmatpush1.bf16.msra.mxu1 %v3079_v14  ;;  %v3554_v14 = vld [vmem:[%s3932_s21 + $0xe8] sm:$0xff]  }
 0xa22   : > { %2152 = vmatprep.subr.bf16.mxu1 %v3084_v16  ;;  %v3560_v16 = vld [vmem:[%s3932_s21 + $0xb0] sm:$0xff]  }
 0xa25   : > { %2153 = vmatpush1.bf16.msra.mxu1 %v3083_v12  ;;  %v3562_v12 = vld [vmem:[%s3932_s21 + $0xf8] sm:$0xff]  }
 0xa26   : > { %2154 = vmatprep.subr.bf16.mxu1 %v3088_v29  ;;  %v1971_v29 = vrot.slane %v4113_v56, %v1966_v25 }
 0xa29   : > { %2155 = vmatpush1.bf16.msra.mxu1 %v3087_v31 }
 0xa2a   : > { %3240 = vmatprep.subr.bf16.mxu1 %v3533_v11 }
 0xa9c   : > { %v1930_v35 = vpop.xlane.xlu0 %1929 }
 0xa9d   : > { %v1933_v37 = vmul.f32 0.0078125, %v1930_v35 }
 0xa9e   : > { %v1932_v40 = vpop.xlane.xlu1 %1931 }
 0xa9f   : > { %v4282_v41 = vsub.f32 %v4266_v15, %v1933_v37  ;;  %v1934_v42 = vmul.f32 0.0078125, %v1932_v40 }
 0xaa1   : > { %v4285_v52 = vsub.f32 %v4269_v3, %v1934_v42  ;;  %v1937_v55 = vmul.f32 %v4282_v41, %v4282_v41 }
 0xaa3   : > { %1939 = vadd.xlane.f32.xlu0 %v1937_v55  ;;  %v1938_v1 = vmul.f32 %v4285_v52, %v4285_v52 }
 0xaa7   : > { %1941 = vadd.xlane.f32.xlu0 %v1938_v1 }
 0xb30   : > { %v1940_v35 = vpop.xlane.xlu0 %1939 }
 0xb31   : > { %v1943_v37 = vmul.f32 0.0078125, %v1940_v35 }
 0xb33   : > { %v1945_v40 = vadd.f32 1e-06, %v1943_v37 }
 0xb34   : > { %v1942_v42 = vpop.xlane.xlu0 %1941 }
 0xb35   : > { %3601 = vrsqrt.f32 %v1945_v40  ;;  %v1944_v55 = vmul.f32 0.0078125, %v1942_v42 }
 0xb37   : > { %v1946_v1 = vadd.f32 1e-06, %v1944_v55 }
 0xb39   : > { %3603 = vrsqrt.f32 %v1946_v1 }
 0xb3f   : > { %v3602_v60 = vpop.eup %3601 }
 0xb40   : > { %v1949_v63 = vmul.f32 %v3602_v60, %v4282_v41  ;;  %v3534_v41 = vld [vmem:[%s3932_s21 + $0xc0] sm:$0xff]  }
 0xb41   : > { %3262 = vmatprep.subr.bf16.mxu0 %v3534_v41 }
 0xb42   : > { %v1955_v4 = vmul.f32 %v1954_v62, %v1949_v63 }
 0xb43   : > { %v3604_v51 = vpop.eup %3603 }
 0xb44   : > { %v1950_v2 = vmul.f32 %v3604_v51, %v4285_v52  ;;  %v1961_v43 = vadd.f32 %v1960_v22, %v1955_v4  ;;  %v3537_v52 = vld [vmem:[%s3932_s21 + $0x48] sm:$0xff]  }
 0xb46   : > { %v1956_v59 = vmul.f32 %v1954_v62, %v1950_v2 }
 0xb48   : > { %v1962_v6 = vadd.f32 %v1960_v22, %v1956_v59 }
 0xb4a   : > { %v1963_v9 = vpack.c.bf16 %v1962_v6, %v1961_v43 }
 0xb4c   : > { %2173 = vmatmul.mubr.bf16.vlgmr.msra.gmra.mrb[28].mxu1 %v1963_v9  ;;  %2216 = vmatmul.mubr.bf16.vlgmr.msra.gmra.mrb[16].mxu0 %v1963_v9 }
 0xb4d   : > { %3241 = vmatpush3.bf16.msra.mxu1 %v3535_v24  ;;  %3263 = vmatpush3.bf16.msra.mxu0 %v3536_v48 }
 0xb4e   : > { %3242 = vmatprep.subr.bf16.mxu1 %v3537_v52  ;;  %3264 = vmatprep.subr.bf16.mxu0 %v3538_v28 }
 0xb51   : > { %3243 = vmatpush3.bf16.msra.mxu1 %v3539_v39  ;;  %3265 = vmatpush3.bf16.msra.mxu0 %v3540_v45 }
 0xb52   : > { %3244 = vmatprep.subr.bf16.mxu1 %v3541_v46  ;;  %3266 = vmatprep.subr.bf16.mxu0 %v3542_v49 }
 0xb55   : > { %3245 = vmatpush3.bf16.msra.mxu1 %v3543_v53  ;;  %3267 = vmatpush3.bf16.msra.mxu0 %v3544_v54 }
 0xb56   : > { %3246 = vmatprep.subr.bf16.mxu1 %v3545_v57  ;;  %3268 = vmatprep.subr.bf16.mxu0 %v3546_v58 }
 0xb59   : > { %3247 = vmatpush3.bf16.msra.mxu1 %v3547_v61  ;;  %3269 = vmatpush3.bf16.msra.mxu0 %v3548_v0 }
 0xb5a   : > { %3248 = vmatprep.subr.bf16.mxu1 %v3549_v5  ;;  %3270 = vmatprep.subr.bf16.mxu0 %v3550_v38 }
 0xb5d   : > { %3249 = vmatpush3.bf16.msra.mxu1 %v3551_v20  ;;  %3271 = vmatpush3.bf16.msra.mxu0 %v3552_v8 }
 0xb5e   : > { %3250 = vmatprep.subr.bf16.mxu1 %v3553_v10  ;;  %3272 = vmatprep.subr.bf16.mxu0 %v3554_v14 }
 0xb61   : > { %3251 = vmatpush3.bf16.msra.mxu1 %v3555_v19  ;;  %3273 = vmatpush3.bf16.msra.mxu0 %v3556_v21 }
 0xb62   : > { %3252 = vmatprep.subr.bf16.mxu1 %v3557_v32  ;;  %3274 = vmatprep.subr.bf16.mxu0 %v3558_v23 }
 0xb65   : > { %3253 = vmatpush3.bf16.msra.mxu1 %v3559_v27  ;;  %3275 = vmatpush3.bf16.msra.mxu0 %v3560_v16 }
 0xb66   : > { %3254 = vmatprep.subr.bf16.mxu1 %v3561_v44  ;;  %3276 = vmatprep.subr.bf16.mxu0 %v3562_v12 }
 0xb69   : > { %3255 = vmatpush3.bf16.msra.mxu1 %v3563_v13  ;;  %3277 = vmatpush3.bf16.msra.mxu0 %v3564_v18 }
 0xc1f   : > { %v2174_v31 = vpop.f32.mrb[28].mxu1  ;;  %v2217_v33 = vpop.f32.mrb[16].mxu0 }
 0xc20   : > { %v4358_v34 = vadd.f32 %v2174_v31, %v1967_v26  ;;  %v4360_v35 = vadd.f32 %v2217_v33, %v1975_v17  ;;  %v2176_v37 = vpop.f32.mrb[29].mxu1  ;;  %v2219_v40 = vpop.f32.mrb[17].mxu0 }
 0xc21   : > { %v4362_v42 = vadd.f32 %v2176_v37, %v1971_v29  ;;  %v4364_v55 = vadd.f32 %v2219_v40, %v1979_v30  ;;  %v2178_v1 = vpop.f32.mrb[30].mxu1  ;;  %v2221_v50 = vpop.f32.mrb[18].mxu0 }
 0xc22   : > { %v4367_v36 = vmul.f32 0.70710677, %v4358_v34  ;;  %v4370_v56 = vmul.f32 0.70710677, %v4360_v35  ;;  %v2180_v11 = vpop.f32.mrb[31].mxu1  ;;  %v2223_v41 = vpop.f32.mrb[19].mxu0  ;;  %v4382_v48 = vadd.f32 %v2178_v1, %v1967_v26  ;;  %v4384_v52 = vadd.f32 %v2221_v50, %v1975_v17 }
 0xc23   : > { %v4373_v7 = vmul.f32 0.70710677, %v4362_v42  ;;  %v4376_v60 = vmul.f32 0.70710677, %v4364_v55  ;;  %v4389_v45 = vadd.f32 %v2180_v11, %v1971_v29  ;;  %v4395_v54 = vadd.f32 %v2223_v41, %v1979_v30 }
 0xc24   : > { %v2242_v62 = vand.u32 2147483647, %v4367_v36  ;;  %v2244_v63 = vand.u32 2147483647, %v4370_v56  ;;  %v4387_v39 = vmul.f32 0.70710677, %v4382_v48 }
 0xc25   : > { %v2243_v51 = vand.u32 2147483647, %v4373_v7  ;;  %v2245_v22 = vand.u32 2147483647, %v4376_v60  ;;  %v4392_v49 = vmul.f32 0.70710677, %v4384_v52 }
 0xc26   : > { %v2250_v2 = vmul.f32 0.3275911, %v2242_v62  ;;  %v2252_v4 = vmul.f32 0.3275911, %v2244_v63  ;;  %v2346_v46 = vsub.f32 0.0, %v2242_v62  ;;  %v2348_v57 = vsub.f32 0.0, %v2244_v63 }
 0xc27   : > { %v2251_v59 = vmul.f32 0.3275911, %v2243_v51  ;;  %v2253_v9 = vmul.f32 0.3275911, %v2245_v22  ;;  %v2246_v53 = vand.u32 2147483647, %v4387_v39 }
 0xc28   : > { %v2258_v43 = vadd.f32 1.0, %v2250_v2  ;;  %v2260_v6 = vadd.f32 1.0, %v2252_v4  ;;  %v2347_v58 = vsub.f32 0.0, %v2243_v51  ;;  %v2248_v61 = vand.u32 2147483647, %v4392_v49 }
 0xc29   : > { %v2259_v24 = vadd.f32 1.0, %v2251_v59  ;;  %v2261_v28 = vadd.f32 1.0, %v2253_v9  ;;  %v4399_v0 = vmul.f32 0.70710677, %v4389_v45  ;;  %v2349_v5 = vsub.f32 0.0, %v2245_v22 }
 0xc2a   : > { %3605 = vrcp.f32 %v2258_v43  ;;  %v2254_v38 = vmul.f32 0.3275911, %v2246_v53  ;;  %v2354_v20 = vmul.f32 %v2346_v46, %v2242_v62  ;;  %v2256_v8 = vmul.f32 0.3275911, %v2248_v61 }
 0xc2b   : > { %3607 = vrcp.f32 %v2260_v6  ;;  %v2247_v10 = vand.u32 2147483647, %v4399_v0  ;;  %v4403_v19 = vmul.f32 0.70710677, %v4395_v54  ;;  %v2356_v21 = vmul.f32 %v2348_v57, %v2244_v63 }
 0xc2c   : > { %3609 = vrcp.f32 %v2259_v24  ;;  %v2262_v14 = vadd.f32 1.0, %v2254_v38  ;;  %v2355_v32 = vmul.f32 %v2347_v58, %v2243_v51  ;;  %v2264_v23 = vadd.f32 1.0, %v2256_v8 }
 0xc2d   : > { %3611 = vrcp.f32 %v2261_v28  ;;  %v2255_v27 = vmul.f32 0.3275911, %v2247_v10  ;;  %v2357_v44 = vmul.f32 %v2349_v5, %v2245_v22  ;;  %v2350_v12 = vsub.f32 0.0, %v2246_v53 }
 0xc2e   : > { %3613 = vrcp.f32 %v2262_v14  ;;  %v4408_v13 = vand.u32 2147483647, %v4403_v19  ;;  %v2362_v26 = vmul.f32 1.442695, %v2354_v20  ;;  %v2352_v30 = vsub.f32 0.0, %v2248_v61 }
 0xc2f   : > { %3615 = vrcp.f32 %v2264_v23  ;;  %v2263_v17 = vadd.f32 1.0, %v2255_v27  ;;  %v2366_v37 = vmul.f32 1.442695, %v2356_v21  ;;  %v2358_v50 = vmul.f32 %v2350_v12, %v2246_v53 }
 0xc30   : > { %v2257_v31 = vmul.f32 0.3275911, %v4408_v13  ;;  %v2364_v22 = vmul.f32 1.442695, %v2355_v32  ;;  %v2368_v2 = vmul.f32 1.442695, %v2357_v44  ;;  %v2360_v43 = vmul.f32 %v2352_v30, %v2248_v61 }
 0xc31   : > { %3617 = vrcp.f32 %v2263_v17  ;;  %v2351_v6 = vsub.f32 0.0, %v2247_v10  ;;  %v2370_v28 = vmul.f32 1.442695, %v2358_v50  ;;  %v2353_v44 = vsub.f32 0.0, %v4408_v13 }
 0xc32   : > { %v2265_v62 = vadd.f32 1.0, %v2257_v31  ;;  %3619 = vpow2.f32 %v2362_v26  ;;  %v2374_v61 = vmul.f32 1.442695, %v2360_v43  ;;  %vm2394_vm5 = vcmp.ge.f32.partialorder %v4367_v36, 0.0 }
 0xc33   : > { %v2359_v38 = vmul.f32 %v2351_v6, %v2247_v10  ;;  %vm2396_vm6 = vcmp.ge.f32.partialorder %v4370_v56, 0.0  ;;  %vm2395_vm7 = vcmp.ge.f32.partialorder %v4373_v7, 0.0  ;;  %vm2398_vm8 = vcmp.ge.f32.partialorder %v4387_v39, 0.0 }
 0xc34   : > { %v4405_v16 = vpop.eup %3605  ;;  %3621 = vrcp.f32 %v2265_v62  ;;  %vm2400_vm9 = vcmp.ge.f32.partialorder %v4392_v49, 0.0  ;;  %vm2399_vm10 = vcmp.ge.f32.partialorder %v4399_v0, 0.0  ;;  %vm2397_vm11 = vcmp.ge.f32.partialorder %v4376_v60, 0.0 }
 0xc35   : > { %v4410_v18 = vpop.eup %3607  ;;  %v2274_v25 = vmul.f32 1.0614054, %v4405_v16  ;;  %3623 = vpow2.f32 %v2366_v37  ;;  %v2372_v31 = vmul.f32 1.442695, %v2359_v38  ;;  %vm2401_vm12 = vcmp.ge.f32.partialorder %v4403_v19, 0.0 }
 0xc36   : > { %v2276_v29 = vmul.f32 1.0614054, %v4410_v18  ;;  %v4415_v40 = vpop.eup %3609  ;;  %3625 = vpow2.f32 %v2364_v22  ;;  %v2233_v60 = vmul.f32 0.5, %v4395_v54 }
 0xc37   : > { %v2282_v33 = vadd.f32 -1.4531521, %v2274_v25  ;;  %v2275_v51 = vmul.f32 1.0614054, %v4415_v40  ;;  %v4419_v4 = vpop.eup %3611  ;;  %3627 = vpow2.f32 %v2368_v2  ;;  %v2361_v2 = vmul.f32 %v2353_v44, %v4408_v13 }
 0xc38   : > { %v2284_v1 = vadd.f32 -1.4531521, %v2276_v29  ;;  %v2277_v41 = vmul.f32 1.0614054, %v4419_v4  ;;  %v4425_v58 = vpop.eup %3613  ;;  %3629 = vpow2.f32 %v2370_v28 }
 0xc39   : > { %v2290_v63 = vmul.f32 %v4405_v16, %v2282_v33  ;;  %v2283_v11 = vadd.f32 -1.4531521, %v2275_v51  ;;  %v4428_v20 = vpop.eup %3615  ;;  %v2278_v32 = vmul.f32 1.0614054, %v4425_v58  ;;  %3631 = vpow2.f32 %v2374_v61 }
 0xc3a   : > { %v2292_v59 = vmul.f32 %v4410_v18, %v2284_v1  ;;  %v2285_v57 = vadd.f32 -1.4531521, %v2277_v41  ;;  %v2280_v27 = vmul.f32 1.0614054, %v4428_v20  ;;  %3633 = vpow2.f32 %v2372_v31 }
 0xc3b   : > { %v2298_v9 = vadd.f32 1.4214138, %v2290_v63  ;;  %v2291_v53 = vmul.f32 %v4415_v40, %v2283_v11  ;;  %v2286_v10 = vadd.f32 -1.4531521, %v2278_v32  ;;  %v4436_v17 = vpop.eup %3617 }
 0xc3c   : > { %v2300_v24 = vadd.f32 1.4214138, %v2292_v59  ;;  %v2293_v21 = vmul.f32 %v4419_v4, %v2285_v57  ;;  %v2288_v30 = vadd.f32 -1.4531521, %v2280_v27  ;;  %v3620_v62 = vpop.eup %3619  ;;  %v2279_v22 = vmul.f32 1.0614054, %v4436_v17 }
 0xc3d   : > { %v2306_v46 = vmul.f32 %v4405_v16, %v2298_v9  ;;  %v2299_v14 = vadd.f32 1.4214138, %v2291_v53  ;;  %v2294_v50 = vmul.f32 %v4425_v58, %v2286_v10 }
 0xc3e   : > { %v2308_v5 = vmul.f32 %v4410_v18, %v2300_v24  ;;  %v2301_v26 = vadd.f32 1.4214138, %v2293_v21  ;;  %v2296_v51 = vmul.f32 %v4428_v20, %v2288_v30  ;;  %v4444_v59 = vpop.eup %3621 }
 0xc3f   : > { %v2314_v8 = vadd.f32 -0.28449672, %v2306_v46  ;;  %v2307_v25 = vmul.f32 %v4415_v40, %v2299_v14  ;;  %v2302_v11 = vadd.f32 1.4214138, %v2294_v50  ;;  %v3624_v41 = vpop.eup %3623  ;;  %v2287_v46 = vadd.f32 -1.4531521, %v2279_v22 }
 0xc40   : > { %v2316_v23 = vadd.f32 -0.28449672, %v2308_v5  ;;  %v2309_v1 = vmul.f32 %v4419_v4, %v2301_v26  ;;  %v2304_v28 = vadd.f32 1.4214138, %v2296_v51  ;;  %v2281_v53 = vmul.f32 1.0614054, %v4444_v59  ;;  %v3626_v57 = vpop.eup %3625 }
 0xc41   : > { %v2322_v12 = vmul.f32 %v4405_v16, %v2314_v8  ;;  %v2315_v37 = vadd.f32 -0.28449672, %v2307_v25  ;;  %v2310_v38 = vmul.f32 %v4425_v58, %v2302_v11  ;;  %v3628_v8 = vpop.eup %3627  ;;  %v2295_v21 = vmul.f32 %v4436_v17, %v2287_v46 }
 0xc42   : > { %v2324_v29 = vmul.f32 %v4410_v18, %v2316_v23  ;;  %v2317_v9 = vadd.f32 -0.28449672, %v2309_v1  ;;  %v2312_v14 = vmul.f32 %v4428_v20, %v2304_v28  ;;  %v2289_v32 = vadd.f32 -1.4531521, %v2281_v53  ;;  %v3630_v44 = vpop.eup %3629 }
 0xc43   : > { %v2330_v33 = vadd.f32 0.2548296, %v2322_v12  ;;  %v2323_v6 = vmul.f32 %v4415_v40, %v2315_v37  ;;  %v2318_v27 = vadd.f32 -0.28449672, %v2310_v38  ;;  %v2303_v25 = vadd.f32 1.4214138, %v2295_v21  ;;  %v3632_v37 = vpop.eup %3631 }
 0xc44   : > { %v2332_v63 = vadd.f32 0.2548296, %v2324_v29  ;;  %v2325_v13 = vmul.f32 %v4419_v4, %v2317_v9  ;;  %v2320_v12 = vadd.f32 -0.28449672, %v2312_v14  ;;  %v2297_v26 = vmul.f32 %v4444_v59, %v2289_v32 }
 0xc45   : > { %v2338_v43 = vmul.f32 %v4405_v16, %v2330_v33  ;;  %v2331_v61 = vadd.f32 0.2548296, %v2323_v6  ;;  %v2326_v30 = vmul.f32 %v4425_v58, %v2318_v27  ;;  %v2376_v33 = vmul.f32 1.442695, %v2361_v2 }
 0xc46   : > { %v2340_v24 = vmul.f32 %v4410_v18, %v2332_v63  ;;  %v2333_v23 = vadd.f32 0.2548296, %v2325_v13  ;;  %v2328_v50 = vmul.f32 %v4428_v20, %v2320_v12  ;;  %v2226_v22 = vmul.f32 0.5, %v4358_v34  ;;  %v3634_v13 = vpop.eup %3633 }
 0xc47   : > { %v2378_v5 = vmul.f32 %v3620_v62, %v2338_v43  ;;  %v2339_v18 = vmul.f32 %v4415_v40, %v2331_v61  ;;  %v2311_v62 = vmul.f32 %v4436_v17, %v2303_v25  ;;  %v2305_v40 = vadd.f32 1.4214138, %v2297_v26 }
 0xc48   : > { %v2380_v16 = vmul.f32 %v3624_v41, %v2340_v24  ;;  %v2341_v63 = vmul.f32 %v4419_v4, %v2333_v23  ;;  %v2334_v51 = vadd.f32 0.2548296, %v2326_v30  ;;  %v2336_v31 = vadd.f32 0.2548296, %v2328_v50 }
 0xc49   : > { %v2386_v10 = vsub.f32 1.0, %v2378_v5  ;;  %v2379_v1 = vmul.f32 %v3626_v57, %v2339_v18  ;;  %v2319_v43 = vadd.f32 -0.28449672, %v2311_v62  ;;  %3635 = vpow2.f32 %v2376_v33 }
 0xc4a   : > { %v2388_v29 = vsub.f32 1.0, %v2380_v16  ;;  %v2342_v11 = vmul.f32 %v4425_v58, %v2334_v51  ;;  %v2344_v41 = vmul.f32 %v4428_v20, %v2336_v31  ;;  %v2313_v28 = vmul.f32 %v4444_v59, %v2305_v40 }
 0xc4b   : > { %v2402_v6 = vsub.f32 0.0, %v2386_v10  ;;  %v2387_v2 = vsub.f32 1.0, %v2379_v1  ;;  %v2327_v24 = vmul.f32 %v4436_v17, %v2319_v43  ;;  %v2228_v46 = vmul.f32 0.5, %v4360_v35 }
 0xc4c   : > { %v2404_v9 = vsub.f32 0.0, %v2388_v29  ;;  %v2227_v4 = vmul.f32 0.5, %v4362_v42  ;;  %v2381_v53 = vmul.f32 %v3628_v8, %v2341_v63  ;;  %v2382_v34 = vmul.f32 %v3630_v44, %v2342_v11 }
 0xc4d   : > { %v2384_v57 = vmul.f32 %v3632_v37, %v2344_v41  ;;  %v2335_v5 = vadd.f32 0.2548296, %v2327_v24  ;;  %v2321_v61 = vadd.f32 -0.28449672, %v2313_v28  ;;  %v2410_v58 = vsel %vm2394_vm5, %v2386_v10, %v2402_v6 }
 0xc4e   : > { %v2390_v20 = vsub.f32 1.0, %v2382_v34  ;;  %v2412_v38 = vsel %vm2396_vm6, %v2388_v29, %v2404_v9  ;;  %v2403_v16 = vsub.f32 0.0, %v2387_v2  ;;  %v2389_v42 = vsub.f32 1.0, %v2381_v53 }
 0xc4f   : > { %v2392_v14 = vsub.f32 1.0, %v2384_v57  ;;  %v2343_v35 = vmul.f32 %v4436_v17, %v2335_v5  ;;  %v2230_v8 = vmul.f32 0.5, %v4382_v48  ;;  %v2329_v36 = vmul.f32 %v4444_v59, %v2321_v61 }
 0xc50   : > { %v2406_v21 = vsub.f32 0.0, %v2390_v20  ;;  %v2418_v32 = vadd.f32 1.0, %v2410_v58  ;;  %v2420_v23 = vadd.f32 1.0, %v2412_v38  ;;  %v2411_v12 = vsel %vm2395_vm7, %v2387_v2, %v2403_v16  ;;  %v3637_v16 = vld [vmem:[%s3948_s20] sm:$0xff] }
 0xc51   : > { %v2408_v18 = vsub.f32 0.0, %v2392_v14  ;;  %v2383_v56 = vmul.f32 %v3634_v13, %v2343_v35  ;;  %v2337_v44 = vadd.f32 0.2548296, %v2329_v36  ;;  %v2405_v10 = vsub.f32 0.0, %v2389_v42 }
 0xc52   : > { %v2414_v27 = vsel %vm2398_vm8, %v2390_v20, %v2406_v21  ;;  %v2232_v29 = vmul.f32 0.5, %v4384_v52  ;;  %v2426_v33 = vmul.f32 %v2418_v32, %v2226_v22  ;;  %v2428_v49 = vmul.f32 %v2420_v23, %v2228_v46 }
 0xc53   : > { %v2422_v17 = vadd.f32 1.0, %v2414_v27  ;;  %v2416_v25 = vsel %vm2400_vm9, %v2392_v14, %v2408_v18  ;;  %v2391_v26 = vsub.f32 1.0, %v2383_v56  ;;  %v3636_v48 = vpop.eup %3635  ;;  %v2345_v39 = vmul.f32 %v4444_v59, %v2337_v44 }
 0xc54   : > { %v2424_v30 = vadd.f32 1.0, %v2416_v25  ;;  %v2419_v50 = vadd.f32 1.0, %v2411_v12  ;;  %v2231_v63 = vmul.f32 0.5, %v4389_v45  ;;  %v2413_v31 = vsel %vm2397_vm11, %v2389_v42, %v2405_v10  ;;  %v3639_v25 = vld [vmem:[%s4548_s6 + $0x8] sm:$0xff] (!%p3123_p4)   ;;  %v3642_v10 = vld [vmem:[%s4548_s6 + $0x20] sm:$0xff] (!%p3123_p4)  }
 0xc55   : > { %v2430_v37 = vmul.f32 %v2422_v17, %v2230_v8  ;;  %v2407_v1 = vsub.f32 0.0, %v2391_v26  ;;  %v2385_v7 = vmul.f32 %v3636_v48, %v2345_v39  ;;  %v2421_v11 = vadd.f32 1.0, %v2413_v31  ;;  %v3641_v48 = vld [vmem:[%s4548_s6 + $0x18] sm:$0xff] (!%p3123_p4)  }
 0xc56   : > { %v2432_v62 = vmul.f32 %v2424_v30, %v2232_v29  ;;  %v2427_v59 = vmul.f32 %v2419_v50, %v2227_v4  ;;  %v2229_v41 = vmul.f32 0.5, %v4364_v55  ;;  %v2716_v55 = vsub.s32 3, %v4101_v47  ;;  %v3638_v47 = vld [vmem:[%s4548_s6] sm:$0xff] (!%p3123_p4)   ;;  %v3643_v29 = vld [vmem:[%s4548_s6 + $0x28] sm:$0xff] (!%p3123_p4)   ;;  %v3644_v30 = vld [vmem:[%s4548_s6 + $0x30] sm:$0xff] (!%p3123_p4)  }
 0xc57   : > { %v2434_v40 = vpack.c.bf16 %v2430_v37, %v2426_v33  ;;  %v2415_v51 = vsel %vm2399_vm10, %v2391_v26, %v2407_v1  ;;  %v2393_v6 = vsub.f32 1.0, %v2385_v7  ;;  %v3758_v18 = vmov (!%p3123_p4), 0.0   ;;  %v3640_v26 = vld [vmem:[%s4548_s6 + $0x10] sm:$0xff] (!%p3123_p4)   ;;  %v3645_v39 = vld [vmem:[%s4548_s6 + $0x38] sm:$0xff] (!%p3123_p4)  }
 0xc58   : > { %v2436_v52 = vpack.c.bf16 %v2432_v62, %v2428_v49  ;;  %v2423_v43 = vadd.f32 1.0, %v2415_v51  ;;  %v2429_v45 = vmul.f32 %v2421_v11, %v2229_v41  ;;  %v2717_v14 = vrot.slane %v3637_v16, %v2716_v55  ;;  %3381 = vmatprep.subr.bf16.mxu0 (!%p3123_p4), %v3758_v18  ;;  %v3126_v11 = vld [vmem:[%s4549_s7 + $0x2] ss:$0 sm:$0xff] (!%p3123_p4) }
 0xc59   : > { %v2409_v9 = vsub.f32 0.0, %v2393_v6 }
 0xc5a   : > { %v2431_v22 = vmul.f32 %v2423_v43, %v2231_v63  ;;  %v3124_v63 = vld [vmem:[%s4549_s7] ss:$0 sm:$0xff] (!%p3123_p4)  ;;  %v3125_v43 = vld [vmem:[%s4549_s7 + $0x1] ss:$0 sm:$0xff] (!%p3123_p4) }
 0xc5b   : > { %v2417_v0 = vsel %vm2401_vm12, %v2393_v6, %v2409_v9 }
 0xc5c   : > { %v2435_v2 = vpack.c.bf16 %v2431_v22, %v2427_v59  ;;  %v2425_v24 = vadd.f32 1.0, %v2417_v0 }
 0xc5e   : > { %2662 = vmatprep.mubr.bf16.mxu1 %v2435_v2  ;;  %v2433_v28 = vmul.f32 %v2425_v24, %v2233_v60 }
 0xc5f   : > { %2663 = vmatmul.mubr.bf16.vlgmr.msra.gmra.mrb[32].mxu1 %v2434_v40 }
 0xc60   : > { %v2437_v46 = vpack.c.bf16 %v2433_v28, %v2429_v45 }
 0xc62   : > { %2703 = vmatprep.mubr.bf16.mxu0 %v2437_v46 }
 0xc63   : > { %2704 = vmatmul.mubr.bf16.vlgmr.msra.gmra.mrb[20].mxu0 %v2436_v52 }
 0xc64   : > { %3382 = vmatpush3.bf16.msra.mxu0 (!%p3123_p4), %v3638_v47  ;;  %3397 = vmatprep.mubr.msk.bf16.mxu0 (!%p3123_p4), %vm3759_vm13, %v3758_v18 }
 0xc65   : > { %3383 = vmatprep.subr.bf16.mxu0 (!%p3123_p4), %v3758_v18 }
 0xc68   : > { %3384 = vmatpush3.bf16.msra.mxu0 (!%p3123_p4), %v3639_v25 }
 0xc69   : > { %3385 = vmatprep.subr.bf16.mxu0 (!%p3123_p4), %v3758_v18 }
 0xc6c   : > { %3386 = vmatpush3.bf16.msra.mxu0 (!%p3123_p4), %v3640_v26 }
 0xc6d   : > { %3387 = vmatprep.subr.bf16.mxu0 (!%p3123_p4), %v3758_v18 }
 0xc70   : > { %3388 = vmatpush3.bf16.msra.mxu0 (!%p3123_p4), %v3641_v48 }
 0xc71   : > { %3389 = vmatprep.subr.bf16.mxu0 (!%p3123_p4), %v3758_v18 }
 0xc74   : > { %3390 = vmatpush3.bf16.msra.mxu0 (!%p3123_p4), %v3642_v10 }
 0xc75   : > { %3391 = vmatprep.subr.bf16.mxu0 (!%p3123_p4), %v3758_v18 }
 0xc78   : > { %3392 = vmatpush3.bf16.msra.mxu0 (!%p3123_p4), %v3643_v29 }
 0xc79   : > { %3393 = vmatprep.subr.bf16.mxu0 (!%p3123_p4), %v3758_v18 }
 0xc7c   : > { %3394 = vmatpush3.bf16.msra.mxu0 (!%p3123_p4), %v3644_v30 }
 0xc7d   : > { %3395 = vmatprep.subr.bf16.mxu0 (!%p3123_p4), %v3758_v18 }
 0xc80   : > { %3396 = vmatpush3.bf16.msra.mxu0 (!%p3123_p4), %v3645_v39 }
 0xd32   : > { %v3256_v4 = vpop.f32.mrb[32].mxu1 }
 0xd33   : > { %v3257_v53 = vpop.f32.mrb[33].mxu1 }
 0xd34   : > { %v3258_v34 = vadd.f32 %v3257_v53, %v3256_v4  ;;  %v3259_v57 = vpop.f32.mrb[34].mxu1 }
 0xd35   : > { %v3260_v19 = vpop.f32.mrb[35].mxu1 }
 0xd36   : > { %v3261_v5 = vadd.f32 %v3260_v19, %v3259_v57  ;;  %v3278_v61 = vpop.f32.mrb[20].mxu0 }
 0xd37   : > { %v3279_v58 = vpop.f32.mrb[21].mxu0 }
 0xd38   : > { %v3280_v54 = vadd.f32 %v3279_v58, %v3278_v61  ;;  %v3281_v20 = vpop.f32.mrb[22].mxu0 }
 0xd39   : > { %v3282_v13 = vpop.f32.mrb[23].mxu0 }
 0xd3a   : > { %v2706_v38 = vadd.f32 %v3280_v54, %v3258_v34  ;;  %v3283_v35 = vadd.f32 %v3282_v13, %v3281_v20 }
 0xd3c   : > { %v2712_v42 = vadd.f32 %v2706_v38, %v4266_v15  ;;  %v2709_v8 = vadd.f32 %v3283_v35, %v3261_v5  ;;  %2725 = sbr.rel (%p3123_p4) target bundleno = 3926 (0xf56), region = 68 }
 0xd3e   : > { %v2718_v21 = vadd.f32 %v2717_v14, %v2712_v42  ;;  %v2713_v36 = vadd.f32 %v2709_v8, %v4269_v3 }
 0xd40   : > { %2720 = vst [vmem:[#allocation2] sm:$0xff] %v2718_v21  ;;  %v2719_v32 = vadd.f32 %v2717_v14, %v2713_v36  ;;  %2728 = vadd.xlane.f32.xlu0 (!%p3123_p4), %v2718_v21 }
 0xd42   : > { %2721 = vst [vmem:[#allocation2 + $0x8] sm:$0xff] %v2719_v32 }
 0xd44   : > { %2730 = vadd.xlane.f32.xlu0 %v2719_v32 }
 0xdcd   : > { %v2729_v15 = vpop.xlane.xlu0 %2728 }
 0xdce   : > { %v2732_v56 = vmul.f32 0.0078125, %v2729_v15 }
 0xdd0   : > { %v2734_v23 = vsub.f32 %v2718_v21, %v2732_v56 }
 0xdd1   : > { %v2731_v3 = vpop.xlane.xlu0 %2730 }
 0xdd2   : > { %v2733_v27 = vmul.f32 0.0078125, %v2731_v3  ;;  %v2736_v44 = vmul.f32 %v2734_v23, %v2734_v23 }
 0xdd4   : > { %v2735_v12 = vsub.f32 %v2719_v32, %v2733_v27  ;;  %2738 = vadd.xlane.f32.xlu1 %v2736_v44 }
 0xdd6   : > { %v2737_v17 = vmul.f32 %v2735_v12, %v2735_v12 }
 0xdd8   : > { %2740 = vadd.xlane.f32.xlu1 %v2737_v17 }
 0xe61   : > { %v2739_v33 = vpop.xlane.xlu1 %2738 }
 0xe62   : > { %v2742_v37 = vmul.f32 0.0078125, %v2739_v33 }
 0xe64   : > { %v2744_v1 = vadd.f32 1e-06, %v2742_v37 }
 0xe65   : > { %v2741_v49 = vpop.xlane.xlu1 %2740 }
 0xe66   : > { %3646 = vrsqrt.f32 %v2744_v1  ;;  %v2743_v50 = vmul.f32 0.0078125, %v2741_v49 }
 0xe68   : > { %v2745_v62 = vadd.f32 1e-06, %v2743_v50 }
 0xe6a   : > { %3648 = vrsqrt.f32 %v2745_v62 }
 0xe70   : > { %v3647_v7 = vpop.eup %3646 }
 0xe71   : > { %v2748_v40 = vmul.f32 %v3647_v7, %v2734_v23 }
 0xe73   : > { %v2754_v52 = vmul.f32 %v3124_v63, %v2748_v40 }
 0xe74   : > { %v3649_v51 = vpop.eup %3648 }
 0xe75   : > { %v2749_v31 = vmul.f32 %v3649_v51, %v2735_v12  ;;  %v2760_v59 = vadd.f32 %v3125_v43, %v2754_v52 }
 0xe77   : > { %v2755_v6 = vmul.f32 %v3124_v63, %v2749_v31 }
 0xe79   : > { %v2761_v22 = vadd.f32 %v3125_v43, %v2755_v6 }
 0xe7b   : > { %v2762_v9 = vpack.c.bf16 %v2761_v22, %v2760_v59 }
 0xe7d   : > { %3398 = vmatmul.mubr.bf16.vlgmr.msra.gmra.mrb[0].mxu0 %v2762_v9 }
 0xf50   : > { %v2866_v0 = vpop.f32.mrb[0].mxu0 }
 0xf51   : > { %v2867_v2 = vadd.f32 %v3126_v11, %v2866_v0  ;;  %v3399_v41 = vpop.f32.mrb[1].mxu0 }
 0xf52   : > { %v2869_v60 = vpop.f32.mrb[2].mxu0 }
 0xf53   : > { %2873 = vst [vmem:[%s4550_s8] sm:$0xff] %v2867_v2  ;;  %v2870_v24 = vadd.f32 %v3126_v11, %v2869_v60  ;;  %v3400_v45 = vpop.f32.mrb[3].mxu0 }
 0xf55   : > { %2874 = vst [vmem:[%s4550_s8 + $0x8] sm:$0xff] %v2870_v24 }
 0xf56 PF: > { %p19_p5 = scmp.ge.s32.totalorder %s3850_s15, 4   ;;  %s4563_s27 = smov %s3738_s28 }
 0xf57   : > { %s4564_s28 = smov %s3742_s29  ;;  %s4565_s29 = smov %s3879_s19 }
 0xf58   : > { %s4566_s30 = smov %s3850_s15  ;;  %21 = sbr.rel (!%p19_p5) target bundleno = 4 (0x4), region = 107 }
 0xf5f   :  { %2886 = vsyncpa [#allocation4], 1 }
 0xf60   :  { %2888 = vsyncpa [#allocation4 + $0x1], 1 }
 0xf61   :  { %2889 = vsyncpa [#allocation6], 1 }
 0xf62   :  { %2891 = vsyncpa [#allocation6 + $0x1], 1 }

</bundles_post_ra>
